<compile_context>
chip_gen: v6e
topology: v6e:2x2x1
jax: 0.10.0
libtpu: 0.0.40
codegen_flags: <defaults>
</compile_context>

<pallas_src>
import functools

import jax
import jax.numpy as jnp
import numpy as np
from jax.experimental import pallas as pl
from jax.experimental.pallas import tpu as pltpu

LANE = 128  # conv channel / head lane padding width


def cnn_kernel(x_ref, w_ref, hw_ref, misc_ref, out_ref, *, k, seq_len):
    # x_ref:    (B*L, 128)        f32   activations, channels on lanes
    # w_ref:    (3, k*128, 256)   bf16  fused conv weights per layer ([out|gate])
    # hw_ref:   (128, 384)        bf16  [l1w | l2w | l3w], each padded to 128 lanes
    # misc_ref: (5+B, 256)        f32   rows 0..2 conv biases, 3 = [l1b|l2b],
    #                                   4 = [l3b|0], 5.. = eps (padded)
    # out_ref:  (B, 384)          f32   [o1 | o2 | o3]
    x = x_ref[...]
    bl = x.shape[0]
    batch = bl // seq_len
    p = k // 2

    # Tap validity masks (batch / zero-padding boundaries), hoisted and
    # pre-broadcast to 128 lanes once; reused by all three conv layers.
    pos = jax.lax.broadcasted_iota(jnp.int32, (bl, LANE), 0) % seq_len
    masks = {d: jnp.logical_and(pos + d >= 0, pos + d < seq_len)
             for d in range(-p, p + 1) if d != 0}

    def conv_glu(h, layer):
        # 'same'-padded conv1d over the flattened (B*L, 128) activations:
        # build all k shifted taps along the lane axis and do ONE fused matmul.
        cols = []
        for t in range(k):                       # static unroll over taps
            d = t - p
            if d == 0:
                cols.append(h)
            else:
                rolled = pltpu.roll(h, shift=(-d) % bl, axis=0)   # XLU rotate
                cols.append(jnp.where(masks[d], rolled, 0.0))
        hcat = jnp.concatenate(cols, axis=1).astype(jnp.bfloat16)  # (bl, k*128)
        acc = jnp.dot(hcat, w_ref[layer],
                      preferred_element_type=jnp.float32)          # (bl, 256)
        acc = acc + misc_ref[layer:layer + 1, :]
        # GLU: [out | gate] halves are 128-lane aligned (whole-vreg slices).
        return acc[:, :LANE] * jax.nn.sigmoid(acc[:, LANE:])

    h = conv_glu(x, 0)     # (B*L, 128), lanes >= F zero
    h = conv_glu(h, 1)     # (B*L, 128), lanes >= 2F zero
    h = conv_glu(h, 2)     # (B*L, 128), lanes >= 3F zero

    # AdaptiveAvgPool1d(1) + squeeze: per-batch mean over L via sublane reduce
    # (requires seq_len % 8 == 0 for a layout-preserving reshape).
    pooled = h.reshape(batch, seq_len, LANE).sum(axis=1) * (1.0 / seq_len)  # (B,128)
    pooled_b = pooled.astype(jnp.bfloat16)

    # Fused layer1/layer2 head matmul -> [o1 | o2], then layer3.
    o12 = jnp.dot(pooled_b, hw_ref[:, :2 * LANE],
                  preferred_element_type=jnp.float32) + misc_ref[3:4, :]
    o12 = jnp.maximum(o12, 0.0)                   # (B, 256)
    o1 = o12[:, :LANE]
    o2 = o12[:, LANE:]
    eps = misc_ref[5:5 + batch, :LANE]            # (B, 128)
    # reparametrize(mean=o1, logvar=o2): eps * exp(0.5*logvar) + mean
    # (o2 is post-ReLU by construction, exactly as in the PyTorch forward).
    z = eps * jnp.exp(0.5 * o2) + o1
    o3 = jnp.maximum(
        jnp.dot(z.astype(jnp.bfloat16), hw_ref[:, 2 * LANE:],
                preferred_element_type=jnp.float32) + misc_ref[4:5, :LANE],
        0.0)                                      # (B, 128)

    out_ref[...] = jnp.concatenate([o12, o3], axis=1)   # (B, 384), lane-dense


def _full_spec(shape):
    nd = len(shape)
    return pl.BlockSpec(shape, lambda i, _nd=nd: (0,) * _nd)


def prepare_params(params):
    """One-time parameter prep: pad / fuse / cast to bf16 (NOT in the hot path)."""
    H = params["l1w"].shape[0]            # 3 * num_filters
    out_dim = params["l3w"].shape[1]      # 96

    def fuse_conv(w, b):
        # w: (k, Cin, 2*C), b: (1, 2*C), [out | gate] along the last dim.
        kk, cin, c2 = w.shape
        c = c2 // 2
        wp = jnp.zeros((kk, LANE, 2 * LANE), jnp.float32)
        wp = wp.at[:, :cin, :c].set(w[:, :, :c])
        wp = wp.at[:, :cin, LANE:LANE + c].set(w[:, :, c:])
        bp = jnp.zeros((1, 2 * LANE), jnp.float32)
        bp = bp.at[:, :c].set(b[:, :c])
        bp = bp.at[:, LANE:LANE + c].set(b[:, c:])
        return wp.reshape(kk * LANE, 2 * LANE), bp

    w1p, b1p = fuse_conv(params["w1"], params["b1"])
    w2p, b2p = fuse_conv(params["w2"], params["b2"])
    w3p, b3p = fuse_conv(params["w3"], params["b3"])
    conv_w = jnp.stack([w1p, w2p, w3p]).astype(jnp.bfloat16)       # (3, k*128, 256)

    pad2 = lambda a, r, c: jnp.pad(a, ((0, r - a.shape[0]), (0, c - a.shape[1])))
    head_w = jnp.concatenate(
        [pad2(params["l1w"], LANE, LANE),
         pad2(params["l2w"], LANE, LANE),
         pad2(params["l3w"], LANE, LANE)], axis=1).astype(jnp.bfloat16)  # (128, 384)

    b12 = jnp.concatenate([jnp.pad(params["l1b"], ((0, 0), (0, LANE - H))),
                           jnp.pad(params["l2b"], ((0, 0), (0, LANE - H)))], axis=1)
    b3r = jnp.pad(params["l3b"], ((0, 0), (0, 2 * LANE - out_dim)))
    bias_slab = jnp.concatenate([b1p, b2p, b3p, b12, b3r], axis=0)  # (5, 256) f32

    return dict(conv_w=conv_w, head_w=head_w, bias_slab=bias_slab)


@functools.partial(jax.jit, static_argnames=("k", "out_dim"))
def cnn_forward(x_ncl, prepped, eps, *, k, out_dim):
    B, cin, L = x_ncl.shape
    H = eps.shape[1]                      # 3 * num_filters

    # NCL -> NLC -> (B*L, 128): channels on lanes, batch folded into matmul rows.
    x_flat = jnp.transpose(x_ncl, (0, 2, 1)).reshape(B * L, cin).astype(jnp.float32)
    if cin < LANE:
        x_flat = jnp.pad(x_flat, ((0, 0), (0, LANE - cin)))

    # Pack eps into the misc slab (biases + eps -> one DMA).
    eps_rows = jnp.pad(eps.astype(jnp.float32), ((0, 0), (0, 2 * LANE - H)))
    misc = jnp.concatenate([prepped["bias_slab"], eps_rows], axis=0)  # (5+B, 256)

    args = (x_flat, prepped["conv_w"], prepped["head_w"], misc)
    out_all = pl.pallas_call(
        functools.partial(cnn_kernel, k=k, seq_len=L),
        grid=(1,),
        in_specs=[_full_spec(a.shape) for a in args],
        out_specs=_full_spec((B, 3 * LANE)),
        out_shape=jax.ShapeDtypeStruct((B, 3 * LANE), jnp.float32),
        compiler_params=pltpu.CompilerParams(dimension_semantics=("arbitrary",)),
    )(*args)

    out1 = out_all[:, :H]
    out2 = out_all[:, LANE:LANE + H]
    out = out_all[:, 2 * LANE:2 * LANE + out_dim]
    return out, out1, out2


def cnn_reference(x_blc, params, eps, *, k):
    """Pure-JAX f32 reference with the same raw weight layout (for validation)."""
    B, L, _ = x_blc.shape

    def conv_glu(h, w, b):
        p = k // 2
        hp_ = jnp.pad(h, ((0, 0), (p, p), (0, 0)))
        cout2 = w.shape[-1]
        acc = jnp.zeros((B, L, cout2), jnp.float32)
        for t in range(k):
            acc = acc + jnp.einsum("blc,cd->bld", hp_[:, t:t + L, :], w[t])
        acc = acc + b
        c = cout2 // 2
        return acc[..., :c] * jax.nn.sigmoid(acc[..., c:])

    h = conv_glu(x_blc, params["w1"], params["b1"])
    h = conv_glu(h, params["w2"], params["b2"])
    h = conv_glu(h, params["w3"], params["b3"])
    pooled = jnp.mean(h, axis=1)
    o1 = jax.nn.relu(pooled @ params["l1w"] + params["l1b"])
    o2 = jax.nn.relu(pooled @ params["l2w"] + params["l2b"])
    z = eps * jnp.exp(0.5 * o2) + o1
    o3 = jax.nn.relu(z @ params["l3w"] + params["l3b"])
    return o3, o1, o2


if __name__ == "__main__":
    F = 32      # num_filters
    k = 3       # k_size (odd -> 'same' output length, padding = k // 2)
    B, L, Cin = 2, 16, 128
    H = 3 * F   # 96
    OUT = 96

    key = jax.random.PRNGKey(0)
    keys = jax.random.split(key, 16)
    _ki = iter(keys)

    def rnd(shape, scale=0.05):
        return (scale * jax.random.normal(next(_ki), shape)).astype(jnp.float32)

    params = dict(
        # Conv1d weights, (k, Cin, 2*Cout) with [out | gate] fused along Cout
        # (PyTorch (2*Cout, Cin, k) weight permuted to (k, Cin, 2*Cout)).
        w1=rnd((k, Cin, 2 * F)),   b1=rnd((1, 2 * F)),
        w2=rnd((k, F, 4 * F)),     b2=rnd((1, 4 * F)),
        w3=rnd((k, 2 * F, 6 * F)), b3=rnd((1, 6 * F)),
        # MLP head, weights stored as (in, out).
        l1w=rnd((H, H)),   l1b=rnd((1, H)),
        l2w=rnd((H, H)),   l2b=rnd((1, H)),
        l3w=rnd((H, OUT)), l3b=rnd((1, OUT)),
    )
    prepped = prepare_params(params)   # one-time pad / fuse / bf16 cast

    # PyTorch NCL input.
    x_ncl = jax.random.normal(next(_ki), (B, Cin, L), dtype=jnp.float32)
    # eps ~ Normal(0, 0.1), drawn deterministically (stands in for torch .normal_(0, 0.1)).
    eps = (0.1 * jax.random.normal(next(_ki), (B, H))).astype(jnp.float32)

    out, out1, out2 = cnn_forward(x_ncl, prepped, eps, k=k, out_dim=OUT)
    jax.block_until_ready((out, out1, out2))

    assert out.shape == (B, OUT) and out1.shape == (B, H) and out2.shape == (B, H)
    assert bool(jnp.isfinite(out).all() & jnp.isfinite(out1).all() & jnp.isfinite(out2).all())

    # Validate against the pure-JAX f32 reference (bf16 matmul inputs -> loose atol).
    r_out, r_o1, r_o2 = cnn_reference(jnp.transpose(x_ncl, (0, 2, 1)), params, eps, k=k)
    np.testing.assert_allclose(np.asarray(out), np.asarray(r_out), atol=2e-2, rtol=0)
    np.testing.assert_allclose(np.asarray(out1), np.asarray(r_o1), atol=2e-2, rtol=0)
    np.testing.assert_allclose(np.asarray(out2), np.asarray(r_o2), atol=2e-2, rtol=0)

    print("KERNEL_OK")
</pallas_src>

<mosaic_0001>
module attributes {stable_mosaic.version = 11 : i64} {
  func.func @cnn_kernel(%arg0: i32, %arg1: memref<32x128xf32, #tpu.memory_space<vmem>>, %arg2: memref<3x384x256xbf16, #tpu.memory_space<vmem>>, %arg3: memref<128x384xbf16, #tpu.memory_space<vmem>>, %arg4: memref<7x256xf32, #tpu.memory_space<vmem>>, %arg5: memref<2x384xf32, #tpu.memory_space<vmem>>) attributes {dimension_semantics = [#tpu.dimension_semantics<arbitrary>], iteration_bounds = array<i64: 1>, scalar_prefetch = 0 : i64, scratch_operands = 0 : i64, tpu.core_type = #tpu.core_type<tc>, window_params = [{pipeline_mode = #tpu.pipeline_mode<synchronous>, transform_indices = @transform_0, window_bounds = array<i64: 32, 128>}, {pipeline_mode = #tpu.pipeline_mode<synchronous>, transform_indices = @transform_1, window_bounds = array<i64: 3, 384, 256>}, {pipeline_mode = #tpu.pipeline_mode<synchronous>, transform_indices = @transform_2, window_bounds = array<i64: 128, 384>}, {pipeline_mode = #tpu.pipeline_mode<synchronous>, transform_indices = @transform_3, window_bounds = array<i64: 7, 256>}, {pipeline_mode = #tpu.pipeline_mode<synchronous>, transform_indices = @transform_4, window_bounds = array<i64: 2, 384>}]} {
    %c0 = arith.constant 0 : index
    %c0_0 = arith.constant 0 : index
    %0 = vector.load %arg1[%c0, %c0_0] : memref<32x128xf32, #tpu.memory_space<vmem>>, vector<32x128xf32>
    %1 = tpu.iota {dimensions = array<i32: 0>} : vector<32x128xi32>
    %c16_i32 = arith.constant 16 : i32
    %c0_i32 = arith.constant 0 : i32
    %2 = arith.cmpi eq, %c16_i32, %c0_i32 : i32
    %c1_i32 = arith.constant 1 : i32
    %3 = arith.select %2, %c1_i32, %c16_i32 : i32
    %4 = vector.broadcast %3 : i32 to vector<32x128xi32>
    %5 = arith.remsi %1, %4 : vector<32x128xi32>
    %c0_i32_1 = arith.constant 0 : i32
    %6 = vector.broadcast %c0_i32_1 : i32 to vector<32x128xi32>
    %7 = arith.cmpi ne, %5, %6 : vector<32x128xi32>
    %c0_i32_2 = arith.constant 0 : i32
    %8 = vector.broadcast %c0_i32_2 : i32 to vector<32x128xi32>
    %9 = arith.cmpi slt, %5, %8 : vector<32x128xi32>
    %c0_i32_3 = arith.constant 0 : i32
    %10 = arith.cmpi slt, %3, %c0_i32_3 : i32
    %11 = vector.broadcast %10 : i1 to vector<32x128xi1>
    %12 = vector.broadcast %11 : vector<32x128xi1> to vector<32x128xi1>
    %13 = arith.xori %9, %12 : vector<32x128xi1>
    %14 = arith.andi %13, %7 : vector<32x128xi1>
    %15 = vector.broadcast %3 : i32 to vector<32x128xi32>
    %16 = arith.addi %5, %15 : vector<32x128xi32>
    %17 = arith.select %14, %16, %5 : vector<32x128xi1>, vector<32x128xi32>
    %c-1_i32 = arith.constant -1 : i32
    %18 = vector.broadcast %c-1_i32 : i32 to vector<32x128xi32>
    %19 = arith.addi %17, %18 : vector<32x128xi32>
    %c0_i32_4 = arith.constant 0 : i32
    %20 = vector.broadcast %c0_i32_4 : i32 to vector<32x128xi32>
    %21 = arith.cmpi sge, %19, %20 : vector<32x128xi32>
    %c-1_i32_5 = arith.constant -1 : i32
    %22 = vector.broadcast %c-1_i32_5 : i32 to vector<32x128xi32>
    %23 = arith.addi %17, %22 : vector<32x128xi32>
    %c16_i32_6 = arith.constant 16 : i32
    %24 = vector.broadcast %c16_i32_6 : i32 to vector<32x128xi32>
    %25 = arith.cmpi slt, %23, %24 : vector<32x128xi32>
    %26 = arith.andi %21, %25 : vector<32x128xi1>
    %c1_i32_7 = arith.constant 1 : i32
    %27 = vector.broadcast %c1_i32_7 : i32 to vector<32x128xi32>
    %28 = arith.addi %17, %27 : vector<32x128xi32>
    %c0_i32_8 = arith.constant 0 : i32
    %29 = vector.broadcast %c0_i32_8 : i32 to vector<32x128xi32>
    %30 = arith.cmpi sge, %28, %29 : vector<32x128xi32>
    %c1_i32_9 = arith.constant 1 : i32
    %31 = vector.broadcast %c1_i32_9 : i32 to vector<32x128xi32>
    %32 = arith.addi %17, %31 : vector<32x128xi32>
    %c16_i32_10 = arith.constant 16 : i32
    %33 = vector.broadcast %c16_i32_10 : i32 to vector<32x128xi32>
    %34 = arith.cmpi slt, %32, %33 : vector<32x128xi32>
    %35 = arith.andi %30, %34 : vector<32x128xi1>
    %c1_i32_11 = arith.constant 1 : i32
    %36 = tpu.dynamic_rotate %0 by %c1_i32_11 dim 0 : vector<32x128xf32>, i32 -> vector<32x128xf32>
    %cst = arith.constant 0.000000e+00 : f32
    %37 = vector.broadcast %cst : f32 to vector<32x128xf32>
    %38 = arith.select %26, %36, %37 : vector<32x128xi1>, vector<32x128xf32>
    %c31_i32 = arith.constant 31 : i32
    %39 = tpu.dynamic_rotate %0 by %c31_i32 dim 0 : vector<32x128xf32>, i32 -> vector<32x128xf32>
    %cst_12 = arith.constant 0.000000e+00 : f32
    %40 = vector.broadcast %cst_12 : f32 to vector<32x128xf32>
    %41 = arith.select %35, %39, %40 : vector<32x128xi1>, vector<32x128xf32>
    %42 = tpu.concatenate %38, %0, %41 in 1 : vector<32x128xf32>, vector<32x128xf32>, vector<32x128xf32> -> vector<32x384xf32>
    %43 = arith.truncf %42 : vector<32x384xf32> to vector<32x384xbf16>
    %c0_13 = arith.constant 0 : index
    %c0_14 = arith.constant 0 : index
    %c0_15 = arith.constant 0 : index
    %44 = vector.load %arg2[%c0_13, %c0_14, %c0_15] : memref<3x384x256xbf16, #tpu.memory_space<vmem>>, vector<1x384x256xbf16>
    %45 = vector.shape_cast %44 : vector<1x384x256xbf16> to vector<384x256xbf16>
    %cst_16 = arith.constant dense<0.000000e+00> : vector<32x256xf32>
    %46 = tpu.matmul %43, %45, %cst_16 {dimension_numbers = #tpu.dot_dimension_numbers<[1], [0], [0], [1], [0, 0, 1, 1], [], []>} : vector<32x384xbf16>, vector<384x256xbf16>, vector<32x256xf32> -> vector<32x256xf32>
    %c0_17 = arith.constant 0 : index
    %c0_18 = arith.constant 0 : index
    %47 = vector.load %arg4[%c0_17, %c0_18] : memref<7x256xf32, #tpu.memory_space<vmem>>, vector<1x256xf32>
    %48 = vector.broadcast %47 : vector<1x256xf32> to vector<32x256xf32>
    %49 = arith.addf %46, %48 : vector<32x256xf32>
    %50 = vector.extract_strided_slice %49 {offsets = [0, 0], sizes = [32, 128], strides = [1, 1]} : vector<32x256xf32> to vector<32x128xf32>
    %51 = vector.extract_strided_slice %49 {offsets = [0, 128], sizes = [32, 128], strides = [1, 1]} : vector<32x256xf32> to vector<32x128xf32>
    %52 = arith.negf %51 : vector<32x128xf32>
    %53 = math.exp %52 : vector<32x128xf32>
    %cst_19 = arith.constant 1.000000e+00 : f32
    %54 = vector.broadcast %cst_19 : f32 to vector<32x128xf32>
    %55 = arith.addf %54, %53 : vector<32x128xf32>
    %56 = arith.divf %54, %55 : vector<32x128xf32>
    %57 = arith.mulf %50, %56 : vector<32x128xf32>
    %c1_i32_20 = arith.constant 1 : i32
    %58 = tpu.dynamic_rotate %57 by %c1_i32_20 dim 0 : vector<32x128xf32>, i32 -> vector<32x128xf32>
    %cst_21 = arith.constant 0.000000e+00 : f32
    %59 = vector.broadcast %cst_21 : f32 to vector<32x128xf32>
    %60 = arith.select %26, %58, %59 : vector<32x128xi1>, vector<32x128xf32>
    %c31_i32_22 = arith.constant 31 : i32
    %61 = tpu.dynamic_rotate %57 by %c31_i32_22 dim 0 : vector<32x128xf32>, i32 -> vector<32x128xf32>
    %cst_23 = arith.constant 0.000000e+00 : f32
    %62 = vector.broadcast %cst_23 : f32 to vector<32x128xf32>
    %63 = arith.select %35, %61, %62 : vector<32x128xi1>, vector<32x128xf32>
    %64 = tpu.concatenate %60, %57, %63 in 1 : vector<32x128xf32>, vector<32x128xf32>, vector<32x128xf32> -> vector<32x384xf32>
    %65 = arith.truncf %64 : vector<32x384xf32> to vector<32x384xbf16>
    %c1 = arith.constant 1 : index
    %c0_24 = arith.constant 0 : index
    %c0_25 = arith.constant 0 : index
    %66 = vector.load %arg2[%c1, %c0_24, %c0_25] : memref<3x384x256xbf16, #tpu.memory_space<vmem>>, vector<1x384x256xbf16>
    %67 = vector.shape_cast %66 : vector<1x384x256xbf16> to vector<384x256xbf16>
    %cst_26 = arith.constant dense<0.000000e+00> : vector<32x256xf32>
    %68 = tpu.matmul %65, %67, %cst_26 {dimension_numbers = #tpu.dot_dimension_numbers<[1], [0], [0], [1], [0, 0, 1, 1], [], []>} : vector<32x384xbf16>, vector<384x256xbf16>, vector<32x256xf32> -> vector<32x256xf32>
    %c1_27 = arith.constant 1 : index
    %c0_28 = arith.constant 0 : index
    %69 = vector.load %arg4[%c1_27, %c0_28] : memref<7x256xf32, #tpu.memory_space<vmem>>, vector<1x256xf32>
    %70 = vector.broadcast %69 : vector<1x256xf32> to vector<32x256xf32>
    %71 = arith.addf %68, %70 : vector<32x256xf32>
    %72 = vector.extract_strided_slice %71 {offsets = [0, 0], sizes = [32, 128], strides = [1, 1]} : vector<32x256xf32> to vector<32x128xf32>
    %73 = vector.extract_strided_slice %71 {offsets = [0, 128], sizes = [32, 128], strides = [1, 1]} : vector<32x256xf32> to vector<32x128xf32>
    %74 = arith.negf %73 : vector<32x128xf32>
    %75 = math.exp %74 : vector<32x128xf32>
    %cst_29 = arith.constant 1.000000e+00 : f32
    %76 = vector.broadcast %cst_29 : f32 to vector<32x128xf32>
    %77 = arith.addf %76, %75 : vector<32x128xf32>
    %78 = arith.divf %76, %77 : vector<32x128xf32>
    %79 = arith.mulf %72, %78 : vector<32x128xf32>
    %c1_i32_30 = arith.constant 1 : i32
    %80 = tpu.dynamic_rotate %79 by %c1_i32_30 dim 0 : vector<32x128xf32>, i32 -> vector<32x128xf32>
    %cst_31 = arith.constant 0.000000e+00 : f32
    %81 = vector.broadcast %cst_31 : f32 to vector<32x128xf32>
    %82 = arith.select %26, %80, %81 : vector<32x128xi1>, vector<32x128xf32>
    %c31_i32_32 = arith.constant 31 : i32
    %83 = tpu.dynamic_rotate %79 by %c31_i32_32 dim 0 : vector<32x128xf32>, i32 -> vector<32x128xf32>
    %cst_33 = arith.constant 0.000000e+00 : f32
    %84 = vector.broadcast %cst_33 : f32 to vector<32x128xf32>
    %85 = arith.select %35, %83, %84 : vector<32x128xi1>, vector<32x128xf32>
    %86 = tpu.concatenate %82, %79, %85 in 1 : vector<32x128xf32>, vector<32x128xf32>, vector<32x128xf32> -> vector<32x384xf32>
    %87 = arith.truncf %86 : vector<32x384xf32> to vector<32x384xbf16>
    %c2 = arith.constant 2 : index
    %c0_34 = arith.constant 0 : index
    %c0_35 = arith.constant 0 : index
    %88 = vector.load %arg2[%c2, %c0_34, %c0_35] : memref<3x384x256xbf16, #tpu.memory_space<vmem>>, vector<1x384x256xbf16>
    %89 = vector.shape_cast %88 : vector<1x384x256xbf16> to vector<384x256xbf16>
    %cst_36 = arith.constant dense<0.000000e+00> : vector<32x256xf32>
    %90 = tpu.matmul %87, %89, %cst_36 {dimension_numbers = #tpu.dot_dimension_numbers<[1], [0], [0], [1], [0, 0, 1, 1], [], []>} : vector<32x384xbf16>, vector<384x256xbf16>, vector<32x256xf32> -> vector<32x256xf32>
    %c2_37 = arith.constant 2 : index
    %c0_38 = arith.constant 0 : index
    %91 = vector.load %arg4[%c2_37, %c0_38] : memref<7x256xf32, #tpu.memory_space<vmem>>, vector<1x256xf32>
    %92 = vector.broadcast %91 : vector<1x256xf32> to vector<32x256xf32>
    %93 = arith.addf %90, %92 : vector<32x256xf32>
    %94 = vector.extract_strided_slice %93 {offsets = [0, 0], sizes = [32, 128], strides = [1, 1]} : vector<32x256xf32> to vector<32x128xf32>
    %95 = vector.extract_strided_slice %93 {offsets = [0, 128], sizes = [32, 128], strides = [1, 1]} : vector<32x256xf32> to vector<32x128xf32>
    %96 = arith.negf %95 : vector<32x128xf32>
    %97 = math.exp %96 : vector<32x128xf32>
    %cst_39 = arith.constant 1.000000e+00 : f32
    %98 = vector.broadcast %cst_39 : f32 to vector<32x128xf32>
    %99 = arith.addf %98, %97 : vector<32x128xf32>
    %100 = arith.divf %98, %99 : vector<32x128xf32>
    %101 = arith.mulf %94, %100 : vector<32x128xf32>
    %102 = vector.shape_cast %101 : vector<32x128xf32> to vector<2x16x128xf32>
    %cst_40 = arith.constant dense<0.000000e+00> : vector<2x128xf32>
    %103 = vector.multi_reduction <add>, %102, %cst_40 [1] : vector<2x16x128xf32> to vector<2x128xf32>
    %cst_41 = arith.constant 6.250000e-02 : f32
    %104 = vector.broadcast %cst_41 : f32 to vector<2x128xf32>
    %105 = arith.mulf %103, %104 : vector<2x128xf32>
    %106 = arith.truncf %105 : vector<2x128xf32> to vector<2x128xbf16>
    %c0_42 = arith.constant 0 : index
    %c0_43 = arith.constant 0 : index
    %107 = vector.load %arg3[%c0_42, %c0_43] : memref<128x384xbf16, #tpu.memory_space<vmem>>, vector<128x256xbf16>
    %cst_44 = arith.constant dense<0.000000e+00> : vector<2x256xf32>
    %108 = tpu.matmul %106, %107, %cst_44 {dimension_numbers = #tpu.dot_dimension_numbers<[1], [0], [0], [1], [0, 0, 1, 1], [], []>} : vector<2x128xbf16>, vector<128x256xbf16>, vector<2x256xf32> -> vector<2x256xf32>
    %c3 = arith.constant 3 : index
    %c0_45 = arith.constant 0 : index
    %109 = vector.load %arg4[%c3, %c0_45] : memref<7x256xf32, #tpu.memory_space<vmem>>, vector<1x256xf32>
    %110 = vector.broadcast %109 : vector<1x256xf32> to vector<2x256xf32>
    %111 = arith.addf %108, %110 : vector<2x256xf32>
    %cst_46 = arith.constant 0.000000e+00 : f32
    %112 = vector.broadcast %cst_46 : f32 to vector<2x256xf32>
    %113 = arith.maximumf %111, %112 : vector<2x256xf32>
    %114 = vector.extract_strided_slice %113 {offsets = [0, 0], sizes = [2, 128], strides = [1, 1]} : vector<2x256xf32> to vector<2x128xf32>
    %115 = vector.extract_strided_slice %113 {offsets = [0, 128], sizes = [2, 128], strides = [1, 1]} : vector<2x256xf32> to vector<2x128xf32>
    %c5 = arith.constant 5 : index
    %c0_47 = arith.constant 0 : index
    %116 = vector.load %arg4[%c5, %c0_47] : memref<7x256xf32, #tpu.memory_space<vmem>>, vector<2x128xf32>
    %cst_48 = arith.constant 5.000000e-01 : f32
    %117 = vector.broadcast %cst_48 : f32 to vector<2x128xf32>
    %118 = arith.mulf %117, %115 : vector<2x128xf32>
    %119 = math.exp %118 : vector<2x128xf32>
    %120 = arith.mulf %116, %119 : vector<2x128xf32>
    %121 = arith.addf %120, %114 : vector<2x128xf32>
    %122 = arith.truncf %121 : vector<2x128xf32> to vector<2x128xbf16>
    %c0_49 = arith.constant 0 : index
    %c256 = arith.constant 256 : index
    %123 = vector.load %arg3[%c0_49, %c256] : memref<128x384xbf16, #tpu.memory_space<vmem>>, vector<128x128xbf16>
    %cst_50 = arith.constant dense<0.000000e+00> : vector<2x128xf32>
    %124 = tpu.matmul %122, %123, %cst_50 {dimension_numbers = #tpu.dot_dimension_numbers<[1], [0], [0], [1], [0, 0, 1, 1], [], []>} : vector<2x128xbf16>, vector<128x128xbf16>, vector<2x128xf32> -> vector<2x128xf32>
    %c4 = arith.constant 4 : index
    %c0_51 = arith.constant 0 : index
    %125 = vector.load %arg4[%c4, %c0_51] : memref<7x256xf32, #tpu.memory_space<vmem>>, vector<1x128xf32>
    %126 = vector.broadcast %125 : vector<1x128xf32> to vector<2x128xf32>
    %127 = arith.addf %124, %126 : vector<2x128xf32>
    %cst_52 = arith.constant 0.000000e+00 : f32
    %128 = vector.broadcast %cst_52 : f32 to vector<2x128xf32>
    %129 = arith.maximumf %127, %128 : vector<2x128xf32>
    %130 = tpu.concatenate %113, %129 in 1 : vector<2x256xf32>, vector<2x128xf32> -> vector<2x384xf32>
    %c0_53 = arith.constant 0 : index
    %c0_54 = arith.constant 0 : index
    %131 = vector.load %arg5[%c0_53, %c0_54] : memref<2x384xf32, #tpu.memory_space<vmem>>, vector<2x384xf32>
    tpu.vector_store %arg5[%c0_53, %c0_54], %130 {strides = array<i32>} : memref<2x384xf32, #tpu.memory_space<vmem>>, vector<2x384xf32>,
    return
  }
  func.func @transform_0(%arg0: i32) -> (i32, i32) {
    %c0_i32 = arith.constant 0 : i32
    %c0_i32_0 = arith.constant 0 : i32
    %c0_i32_1 = arith.constant 0 : i32
    return %c0_i32, %c0_i32_0 : i32, i32
  }
  func.func @transform_1(%arg0: i32) -> (i32, i32, i32) {
    %c0_i32 = arith.constant 0 : i32
    %c0_i32_0 = arith.constant 0 : i32
    %c0_i32_1 = arith.constant 0 : i32
    %c0_i32_2 = arith.constant 0 : i32
    return %c0_i32, %c0_i32_0, %c0_i32_1 : i32, i32, i32
  }
  func.func @transform_2(%arg0: i32) -> (i32, i32) {
    %c0_i32 = arith.constant 0 : i32
    %c0_i32_0 = arith.constant 0 : i32
    %c0_i32_1 = arith.constant 0 : i32
    return %c0_i32, %c0_i32_0 : i32, i32
  }
  func.func @transform_3(%arg0: i32) -> (i32, i32) {
    %c0_i32 = arith.constant 0 : i32
    %c0_i32_0 = arith.constant 0 : i32
    %c0_i32_1 = arith.constant 0 : i32
    return %c0_i32, %c0_i32_0 : i32, i32
  }
  func.func @transform_4(%arg0: i32) -> (i32, i32) {
    %c0_i32 = arith.constant 0 : i32
    %c0_i32_0 = arith.constant 0 : i32
    %c0_i32_1 = arith.constant 0 : i32
    return %c0_i32, %c0_i32_0 : i32, i32
  }
}

</mosaic_0001>

<bundles_post_ra>
// kernel: cnn_forward.1
= control target key start
LH: loop header
LB: loop body
LE: loop exit
PB: predicated region body
PF: predicated region fallthrough
CT: control target
= control target key end

     0   :  { %9 = vsyncpa [#allocation3], 0  ;;  %s2678_s0 = inlined_call_operand.vmem [shape: f32[32,128], index: 0, kind: input, shape index: {}]   ;;  %s2679_s1 = inlined_call_operand.hbm [shape: bf16[3,384,256], index: 1, kind: input, shape index: {}]   ;;  %s2680_s2 = inlined_call_operand.hbm [shape: bf16[128,384], index: 2, kind: input, shape index: {}]   ;;  %s2681_s3 = inlined_call_operand.vmem [shape: f32[7,256], index: 3, kind: input, shape index: {}]   ;;  %s2682_s4 = inlined_call_operand.vmem [shape: f32[2,384], index: 4, kind: output, shape index: {}]  }
   0x1   :  { %10 = vsyncpa [#allocation5], 0  ;;  %s2466_s15 = smov [#allocation2]  }
   0x2   :  { %s18_s16 = sshll.u32 %s2466_s15, 4  ;;  %s19_s16 = int_to_ptr.vmem [resolvable:$true] %s18_s16 }
   0x3   :  { %s2430_s17 = scalar_lea.vmem %s19_s16, 18432  ;;  %p2435_p1 = scmp.lt.s32.totalorder %s19_s16, %s19_s16 }
   0x4   :  { %p2431_p0 = scmp.ne.s32.totalorder %s19_s16, %s2430_s17  ;;  %p2436_p2 = scmp.lt.s32.totalorder %s2430_s17, %s2430_s17 }
   0x6   :  { %p2437_p3 = por %p2436_p2, %p2435_p1 }
   0x8   :  { %p2438_p4 = pnand %p2437_p3, %p2431_p0 }
   0xa   :  { %2441 = shalt.err (!%p2438_p4)
}
   0xb   :  { %s2467_s18 = smov 128   ;;  %s2468_s19 = smov 8  }
   0xc   :  { %24 = dma.hbm_to_vmem [thread:$0]  %s2679_s1, 18432, %s19_s16, [#allocation3], %s2467_s18, %s2467_s18, %s2468_s19  }
   0xd   :  { %s2469_s22 = smov [#allocation4]  }
   0xe   :  { %s30_s23 = sshll.u32 %s2469_s22, 4  ;;  %s31_s23 = int_to_ptr.vmem [resolvable:$true] %s30_s23 }
   0xf   :  { %s2450_s24 = scalar_lea.vmem %s31_s23, 3072  ;;  %p2455_p6 = scmp.lt.s32.totalorder %s31_s23, %s31_s23 }
  0x10   :  { %p2451_p5 = scmp.ne.s32.totalorder %s31_s23, %s2450_s24  ;;  %p2456_p7 = scmp.lt.s32.totalorder %s2450_s24, %s2450_s24 }
  0x12   :  { %p2457_p8 = por %p2456_p7, %p2455_p6 }
  0x14   :  { %p2458_p9 = pnand %p2457_p8, %p2451_p5 }
  0x16   :  { %2461 = shalt.err (!%p2458_p9)
}
  0x17   :  { %s2470_s25 = smov 192   ;;  %s2471_s26 = smov 12  }
  0x18   :  { %36 = dma.hbm_to_vmem [thread:$0]  %s2680_s2, 3072, %s31_s23, [#allocation5], %s2470_s25, %s2470_s25, %s2471_s26  }
  0x19   :  { %2462 = dma.done.wait [#allocation3], 18432  }
  0x1a   :  { %2463 = vsyncadd [#allocation3], 4294948864 }
  0x1b   :  { %2464 = dma.done.wait [#allocation5], 3072  }
  0x1c   :  { %2465 = vsyncadd [#allocation5], 4294964224  ;;  %v2472_v0 = vmov 0   ;;  %v2124_v1 = vld [vmem:[#allocation2 + $0x74] ss:$8 sps:$4 sm:$0xff]   ;;  %v50_v12 = vlaneseq  ;;  %v2516_v38 = vld [vmem:[%s2678_s0] sm:$0xff] }
  0x1d   :  { %552 = vmatprep.mubr.bf16.mxu1 %v2472_v0  ;;  %v2126_v2 = vld [vmem:[#allocation2 + $0x70] ss:$8 sps:$4 sm:$0xff]   ;;  %467 = vmatprep.subr.bf16.mxu0 %v2124_v1  ;;  %v2127_v3 = vld [vmem:[#allocation2 + $0x64] ss:$8 sps:$4 sm:$0xff]   ;;  %v2129_v4 = vld [vmem:[#allocation2 + $0x60] ss:$8 sps:$4 sm:$0xff]  }
  0x1e   :  { %468 = vmatpush1.bf16.msra.mxu0 %v2126_v2  ;;  %v2130_v5 = vld [vmem:[#allocation2 + $0x54] ss:$8 sps:$4 sm:$0xff]   ;;  %v2132_v6 = vld [vmem:[#allocation2 + $0x50] ss:$8 sps:$4 sm:$0xff]   ;;  %v2133_v7 = vld [vmem:[#allocation2 + $0x44] ss:$8 sps:$4 sm:$0xff]  }
  0x1f   :  { %469 = vmatprep.subr.bf16.mxu0 %v2127_v3  ;;  %v2135_v8 = vld [vmem:[#allocation2 + $0x40] ss:$8 sps:$4 sm:$0xff]   ;;  %v2147_v9 = vld [vmem:[#allocation2 + $0x174] ss:$8 sps:$4 sm:$0xff]   ;;  %v2150_v10 = vld [vmem:[#allocation2 + $0x170] ss:$8 sps:$4 sm:$0xff]  }
  0x20   :  { %v2136_v11 = vld [vmem:[#allocation2 + $0x34] ss:$8 sps:$4 sm:$0xff]   ;;  %520 = vmatprep.subr.bf16.mxu1 %v2147_v9  ;;  %v2153_v13 = vld [vmem:[#allocation2 + $0x164] ss:$8 sps:$4 sm:$0xff]   ;;  %v2156_v14 = vld [vmem:[#allocation2 + $0x160] ss:$8 sps:$4 sm:$0xff]  }
  0x21   :  { %521 = vmatpush1.bf16.msra.mxu1 %v2150_v10  ;;  %v2138_v15 = vld [vmem:[#allocation2 + $0x30] ss:$8 sps:$4 sm:$0xff]   ;;  %v2139_v16 = vld [vmem:[#allocation2 + $0x24] ss:$8 sps:$4 sm:$0xff]   ;;  %v2159_v17 = vld [vmem:[#allocation2 + $0x154] ss:$8 sps:$4 sm:$0xff]  }
  0x22   :  { %470 = vmatpush1.bf16.msra.mxu0 %v2129_v4  ;;  %522 = vmatprep.subr.bf16.mxu1 %v2153_v13  ;;  %v2509_v18 = vshrl.u32 %v50_v12, 7  ;;  %v2162_v19 = vld [vmem:[#allocation2 + $0x150] ss:$8 sps:$4 sm:$0xff]   ;;  %v2141_v20 = vld [vmem:[#allocation2 + $0x20] ss:$8 sps:$4 sm:$0xff]   ;;  %v148_v46 = vrot.slane %v2516_v38, 1 }
  0x23   :  { %471 = vmatprep.subr.bf16.mxu0 %v2130_v5  ;;  %v2165_v21 = vld [vmem:[#allocation2 + $0x144] ss:$8 sps:$4 sm:$0xff]   ;;  %v2142_v22 = vld [vmem:[#allocation2 + $0x14] ss:$8 sps:$4 sm:$0xff]   ;;  %v2144_v24 = vld [vmem:[#allocation2 + $0x10] ss:$8 sps:$4 sm:$0xff]  }
  0x24   :  { %v52_v23 = vadd.s32 8, %v2509_v18  ;;  %v2168_v25 = vld [vmem:[#allocation2 + $0x140] ss:$8 sps:$4 sm:$0xff]   ;;  %v2171_v26 = vld [vmem:[#allocation2 + $0x134] ss:$8 sps:$4 sm:$0xff]   ;;  %v54_v32 = vadd.s32 24, %v2509_v18 }
  0x25   :  { %523 = vmatpush1.bf16.msra.mxu1 %v2156_v14  ;;  %v2145_v27 = vld [vmem:[#allocation2 + $0x4] ss:$8 sps:$4 sm:$0xff]   ;;  %v2174_v29 = vld [vmem:[#allocation2 + $0x130] ss:$8 sps:$4 sm:$0xff]   ;;  %v2149_v30 = vld [vmem:[#allocation2] ss:$8 sps:$4 sm:$0xff]  }
  0x26   :  { %472 = vmatpush1.bf16.msra.mxu0 %v2132_v6  ;;  %524 = vmatprep.subr.bf16.mxu1 %v2159_v17  ;;  %v66_v28 = vand.u32 15, %v52_v23  ;;  %v2177_v31 = vld [vmem:[#allocation2 + $0x124] ss:$8 sps:$4 sm:$0xff]   ;;  %v2151_v33 = vld [vmem:[#allocation2 + $0xf4] ss:$8 sps:$4 sm:$0xff]   ;;  %v80_v39 = vand.u32 15, %v54_v32 }
  0x27   :  { %473 = vmatprep.subr.bf16.mxu0 %v2133_v7  ;;  %v2155_v35 = vld [vmem:[#allocation2 + $0xf0] ss:$8 sps:$4 sm:$0xff]   ;;  %v2180_v36 = vld [vmem:[#allocation2 + $0x120] ss:$8 sps:$4 sm:$0xff]   ;;  %v2183_v37 = vld [vmem:[#allocation2 + $0x114] ss:$8 sps:$4 sm:$0xff]  }
  0x28   :  { %v120_v34 = vadd.s32 1, %v66_v28  ;;  %v2157_v40 = vld [vmem:[#allocation2 + $0xe4] ss:$8 sps:$4 sm:$0xff]   ;;  %v2526_v42 = vld [vmem:[%s2678_s0 + $0x10] sm:$0xff]  ;;  %v2161_v43 = vld [vmem:[#allocation2 + $0xe0] ss:$8 sps:$4 sm:$0xff]  }
  0x29   :  { %525 = vmatpush1.bf16.msra.mxu1 %v2162_v19  ;;  %v2521_v41 = vld [vmem:[%s2678_s0 + $0x8] sm:$0xff]  ;;  %v2186_v44 = vld [vmem:[#allocation2 + $0x110] ss:$8 sps:$4 sm:$0xff]   ;;  %v150_v48 = vrot.slane %v2526_v42, 1  ;;  %v2163_v49 = vld [vmem:[#allocation2 + $0xd4] ss:$8 sps:$4 sm:$0xff]  }
  0x2a   :  { %474 = vmatpush1.bf16.msra.mxu0 %v2135_v8  ;;  %526 = vmatprep.subr.bf16.mxu1 %v2165_v21  ;;  %vm128_vm0 = vcmp.lt.s32.totalorder %v120_v34, 16  ;;  %v162_v45 = vpack.c.bf16 %v2521_v41, %v2516_v38  ;;  %v149_v47 = vrot.slane %v2521_v41, 1  ;;  %v2189_v50 = vld [vmem:[#allocation2 + $0x104] ss:$8 sps:$4 sm:$0xff]   ;;  %vm152_vm1 = vcmp.lt.s32.totalorder %v2509_v18, 7  ;;  %v49_v59 = vld [vmem:[%s2678_s0 + $0x18] sm:$0xff] }
  0x2b   :  { %475 = vmatprep.subr.bf16.mxu0 %v2136_v11  ;;  %vm2473_vm2 = vmmov 1   ;;  %v122_v52 = vadd.s32 1, %v80_v39  ;;  %v2192_v53 = vld [vmem:[#allocation2 + $0x100] ss:$8 sps:$4 sm:$0xff]   ;;  %v2167_v54 = vld [vmem:[#allocation2 + $0xd0] ss:$8 sps:$4 sm:$0xff]  }
  0x2c   :  { %vm2535_vm3 = vmpackc.low %vm128_vm0, %vm2473_vm2  ;;  %499 = vmatprep.mubr.bf16.mxu0 %v162_v45  ;;  %v2198_v55 = vld [vmem:[#allocation2 + $0x1f4] ss:$8 sps:$4 sm:$0xff]   ;;  %v2169_v56 = vld [vmem:[#allocation2 + $0xc4] ss:$8 sps:$4 sm:$0xff]   ;;  %v154_v57 = vsel %vm152_vm1, %v149_v47, %v150_v48  ;;  %v155_v58 = vsel %vm152_vm1, %v148_v46, %v149_v47  ;;  %v151_v1 = vrot.slane %v49_v59, 1  ;;  %v59_v3 = vand.u32 15, %v2509_v18 }
  0x2d   :  { %527 = vmatpush1.bf16.msra.mxu1 %v2168_v25  ;;  %vm130_vm4 = vcmp.lt.s32.totalorder %v122_v52, 16  ;;  %v2196_v60 = vld [vmem:[#allocation2 + $0x1f0] ss:$8 sps:$4 sm:$0xff]   ;;  %v2173_v61 = vld [vmem:[#allocation2 + $0xc0] ss:$8 sps:$4 sm:$0xff]   ;;  %v1920_v62 = vpack.c.bf16 %v154_v57, %v155_v58  ;;  %v53_v9 = vadd.s32 16, %v2509_v18 }
  0x2e   :  { %476 = vmatpush1.bf16.msra.mxu0 %v2138_v15  ;;  %528 = vmatprep.subr.bf16.mxu1 %v2171_v26  ;;  %v2175_v63 = vld [vmem:[#allocation2 + $0xb4] ss:$8 sps:$4 sm:$0xff]   ;;  %vm2547_vm5 = vmpackc.low %vm130_vm4, %vm2473_vm2  ;;  %v2179_v4 = vld [vmem:[#allocation2 + $0xb0] ss:$8 sps:$4 sm:$0xff]   ;;  %v153_v6 = vsel %vm152_vm1, %v150_v48, %v151_v1  ;;  %v156_v7 = vsel %vm152_vm1, %v151_v1, %v148_v46  ;;  %v103_v8 = vadd.s32 4294967295, %v59_v3  ;;  %v136_v17 = vrot.slane %v2521_v41, 7 }
  0x2f   :  { %477 = vmatprep.subr.bf16.mxu0 %v2139_v16  ;;  %v2181_v5 = vld [vmem:[#allocation2 + $0xa4] ss:$8 sps:$4 sm:$0xff]   ;;  %v2185_v10 = vld [vmem:[#allocation2 + $0xa0] ss:$8 sps:$4 sm:$0xff]   ;;  %v1923_v11 = vpack.c.bf16 %v156_v7, %v153_v6  ;;  %v2187_v12 = vld [vmem:[#allocation2 + $0x94] ss:$8 sps:$4 sm:$0xff]   ;;  %v165_v26 = vpack.c.bf16 %v49_v59, %v2526_v42 }
  0x30   :  { %vm107_vm6 = vcmp.ge.s32.totalorder %v103_v8, 0  ;;  %v73_v13 = vand.u32 15, %v53_v9  ;;  %v2191_v14 = vld [vmem:[#allocation2 + $0x90] ss:$8 sps:$4 sm:$0xff]   ;;  %v2193_v15 = vld [vmem:[#allocation2 + $0x84] ss:$8 sps:$4 sm:$0xff]  }
  0x31   :  { %529 = vmatpush1.bf16.msra.mxu1 %v2174_v29  ;;  %v135_v16 = vrot.slane %v2516_v38, 7  ;;  %v138_v19 = vrot.slane %v49_v59, 7  ;;  %vm2565_vm7 = vmpackc.low %vm2473_vm2, %vm107_vm6  ;;  %vm139_vm8 = vcmp.lt.s32.totalorder %v2509_v18, 1  ;;  %v2199_v32 = vld [vmem:[#allocation2 + $0x1e0] ss:$8 sps:$4 sm:$0xff]   ;;  %vm1584_vm11 = vcmask 1041409  }
  0x32   :  { %478 = vmatpush1.bf16.msra.mxu0 %v2141_v20  ;;  %530 = vmatprep.subr.bf16.mxu1 %v2177_v31  ;;  %v105_v21 = vadd.s32 4294967295, %v73_v13  ;;  %v2204_v34 = vld [vmem:[#allocation2 + $0x1d4] ss:$8 sps:$4 sm:$0xff]   ;;  %v2208_v39 = vld [vmem:[#allocation2 + $0x1b0] ss:$8 sps:$4 sm:$0xff]   ;;  %vm2475_vm12 = vmmov 0  }
  0x33   :  { %479 = vmatprep.subr.bf16.mxu0 %v2142_v22  ;;  %v2195_v22 = vld [vmem:[#allocation2 + $0x80] ss:$8 sps:$4 sm:$0xff]   ;;  %v142_v23 = vsel %vm139_vm8, %v135_v16, %v136_v17  ;;  %v2210_v38 = vld [vmem:[#allocation2 + $0x1b4] ss:$8 sps:$4 sm:$0xff]   ;;  %v2220_v47 = vld [vmem:[#allocation2 + $0x2f0] ss:$8 sps:$4 sm:$0xff]  }
  0x34   :  { %vm109_vm9 = vcmp.ge.s32.totalorder %v105_v21, 0  ;;  %v2211_v41 = vld [vmem:[#allocation2 + $0x1a0] ss:$8 sps:$4 sm:$0xff]   ;;  %v2222_v45 = vld [vmem:[#allocation2 + $0x2f4] ss:$8 sps:$4 sm:$0xff]  }
  0x35   :  { %531 = vmatpush1.bf16.msra.mxu1 %v2180_v36  ;;  %vm2577_vm10 = vmpackc.low %vm2473_vm2, %vm109_vm9  ;;  %v2207_v36 = vld [vmem:[#allocation2 + $0x1c4] ss:$8 sps:$4 sm:$0xff]   ;;  %v2217_v46 = vld [vmem:[#allocation2 + $0x180] ss:$8 sps:$4 sm:$0xff]  }
  0x36   :  { %480 = vmatpush1.bf16.msra.mxu0 %v2144_v24  ;;  %532 = vmatprep.subr.bf16.mxu1 %v2183_v37  ;;  %v143_v24 = vsel %vm139_vm8, %v138_v19, %v135_v16  ;;  %v2205_v37 = vld [vmem:[#allocation2 + $0x1c0] ss:$8 sps:$4 sm:$0xff]   ;;  %v2225_v48 = vld [vmem:[#allocation2 + $0x274] ss:$8 sps:$4 sm:$0xff]   ;;  %v2240_v58 = vld [vmem:[#allocation2 + $0x2c4] ss:$8 sps:$4 sm:$0xff]  }
  0x37   :  { %481 = vmatprep.subr.bf16.mxu0 %v2145_v27  ;;  %v1914_v25 = vpack.c.bf16 %v142_v23, %v143_v24  ;;  %v137_v27 = vrot.slane %v2526_v42, 7  ;;  %v2216_v42 = vld [vmem:[#allocation2 + $0x194] ss:$8 sps:$4 sm:$0xff]   ;;  %v2226_v52 = vld [vmem:[#allocation2 + $0x2e0] ss:$8 sps:$4 sm:$0xff]  }
  0x38   :  { %v2237_v57 = vld [vmem:[#allocation2 + $0x254] ss:$8 sps:$4 sm:$0xff]   ;;  %v2235_v59 = vld [vmem:[#allocation2 + $0x250] ss:$8 sps:$4 sm:$0xff]   ;;  %v2250_v6 = vld [vmem:[#allocation2 + $0x2a0] ss:$8 sps:$4 sm:$0xff]  }
  0x39   :  { %533 = vmatpush1.bf16.msra.mxu1 %v2186_v44  ;;  %v140_v29 = vsel %vm139_vm8, %v137_v27, %v138_v19  ;;  %v2219_v44 = vld [vmem:[#allocation2 + $0x184] ss:$8 sps:$4 sm:$0xff]   ;;  %v2244_v1 = vld [vmem:[#allocation2 + $0x2b0] ss:$8 sps:$4 sm:$0xff]   ;;  %v2249_v3 = vld [vmem:[#allocation2 + $0x234] ss:$8 sps:$4 sm:$0xff]  }
  0x3a   :  { %482 = vmatpush1.bf16.msra.mxu0 %v2149_v30  ;;  %534 = vmatprep.subr.bf16.mxu1 %v2189_v50  ;;  %v141_v30 = vsel %vm139_vm8, %v136_v17, %v137_v27  ;;  %v2223_v50 = vld [vmem:[#allocation2 + $0x270] ss:$8 sps:$4 sm:$0xff]   ;;  %v2255_v7 = vld [vmem:[#allocation2 + $0x224] ss:$8 sps:$4 sm:$0xff]   ;;  %v2258_v8 = vld [vmem:[#allocation2 + $0x294] ss:$8 sps:$4 sm:$0xff]  }
  0x3b   :  { %483 = vmatprep.subr.bf16.mxu0 %v2151_v33  ;;  %v1917_v31 = vpack.c.bf16 %v140_v29, %v141_v30  ;;  %v2201_v33 = vld [vmem:[#allocation2 + $0x1e4] ss:$8 sps:$4 sm:$0xff]   ;;  %v2253_v9 = vld [vmem:[#allocation2 + $0x220] ss:$8 sps:$4 sm:$0xff]   ;;  %v2259_v13 = vld [vmem:[#allocation2 + $0x210] ss:$8 sps:$4 sm:$0xff]  }
  0x3c   :  { %v2265_v16 = vld [vmem:[#allocation2 + $0x200] ss:$8 sps:$4 sm:$0xff]   ;;  %v2270_v17 = vld [vmem:[#allocation2 + $0x374] ss:$8 sps:$4 sm:$0xff]   ;;  %v2342_v20 = vld [vmem:[#allocation4 + $0xac] ss:$12 sps:$4 sm:$0xff]  }
  0x3d   :  { %535 = vmatpush1.bf16.msra.mxu1 %v2192_v53  ;;  %v2231_v53 = vld [vmem:[#allocation2 + $0x264] ss:$8 sps:$4 sm:$0xff]   ;;  %v215_v24 = vld [vmem:[%s2681_s3] ss:$8 sm:$0x3] }
  0x3e   :  { %484 = vmatpush2.bf16.msra.mxu0 %v2155_v35  ;;  %933 = vmatprep.subr.bf16.mxu1 %v2198_v55  ;;  %v2202_v35 = vld [vmem:[#allocation2 + $0x1d0] ss:$8 sps:$4 sm:$0xff]   ;;  %v2229_v55 = vld [vmem:[#allocation2 + $0x260] ss:$8 sps:$4 sm:$0xff]  }
  0x3f   :  { %485 = vmatprep.subr.bf16.mxu0 %v2157_v40  ;;  %v2213_v40 = vld [vmem:[#allocation2 + $0x1a4] ss:$8 sps:$4 sm:$0xff]   ;;  %v2357_v28 = vld [vmem:[#allocation4 + $0x34] ss:$12 sps:$4 sm:$0xff]  }
  0x40   :  { %1921 = vmatmul.mubr.msk.bf16.vlgmr.msra.gmra.mxu1 %vm2535_vm3, %v1920_v62  ;;  %v2246_v62 = vld [vmem:[#allocation2 + $0x2b4] ss:$8 sps:$4 sm:$0xff]   ;;  %v2346_v2 = vld [vmem:[#allocation4 + $0x78] ss:$12 sps:$4 sm:$0xff]  }
  0x41   :  { %562 = vmatprep.mubr.bf16.mxu1 %v2472_v0  ;;  %934 = vmatpush1.bf16.msra.mxu1 %v2196_v60  ;;  %v2238_v60 = vld [vmem:[#allocation2 + $0x2c0] ss:$8 sps:$4 sm:$0xff]  }
  0x42   :  { %486 = vmatpush2.bf16.msra.mxu0 %v2161_v43  ;;  %935 = vmatprep.subr.bf16.mxu1 %v2201_v33  ;;  %v2214_v43 = vld [vmem:[#allocation2 + $0x190] ss:$8 sps:$4 sm:$0xff]  }
  0x43   :  { %487 = vmatprep.subr.bf16.mxu0 %v2163_v49  ;;  %v2228_v49 = vld [vmem:[#allocation2 + $0x2e4] ss:$8 sps:$4 sm:$0xff]  }
  0x45   :  { %936 = vmatpush1.bf16.msra.mxu1 %v2199_v32 }
  0x46   :  { %488 = vmatpush2.bf16.msra.mxu0 %v2167_v54  ;;  %937 = vmatprep.subr.bf16.mxu1 %v2204_v34  ;;  %v2234_v54 = vld [vmem:[#allocation2 + $0x2d4] ss:$8 sps:$4 sm:$0xff]  }
  0x47   :  { %489 = vmatprep.subr.bf16.mxu0 %v2169_v56  ;;  %v2232_v56 = vld [vmem:[#allocation2 + $0x2d0] ss:$8 sps:$4 sm:$0xff]  }
  0x48   :  { %1924 = vmatmul.mubr.msk.bf16.gmra.mxu1 %vm2547_vm5, %v1923_v11  ;;  %v2261_v11 = vld [vmem:[#allocation2 + $0x214] ss:$8 sps:$4 sm:$0xff]  }
  0x49   :  { %938 = vmatpush1.bf16.msra.mxu1 %v2202_v35 }
  0x4a   :  { %490 = vmatpush2.bf16.msra.mxu0 %v2173_v61  ;;  %939 = vmatprep.subr.bf16.mxu1 %v2207_v36  ;;  %v2243_v61 = vld [vmem:[#allocation2 + $0x244] ss:$8 sps:$4 sm:$0xff]  }
  0x4b   :  { %491 = vmatprep.subr.bf16.mxu0 %v2175_v63  ;;  %v2241_v63 = vld [vmem:[#allocation2 + $0x240] ss:$8 sps:$4 sm:$0xff]  }
  0x4d   :  { %940 = vmatpush1.bf16.msra.mxu1 %v2205_v37 }
  0x4e   :  { %492 = vmatpush2.bf16.msra.mxu0 %v2179_v4  ;;  %941 = vmatprep.subr.bf16.mxu1 %v2210_v38  ;;  %v2252_v4 = vld [vmem:[#allocation2 + $0x2a4] ss:$8 sps:$4 sm:$0xff]  }
  0x4f   :  { %493 = vmatprep.subr.bf16.mxu0 %v2181_v5  ;;  %v2247_v5 = vld [vmem:[#allocation2 + $0x230] ss:$8 sps:$4 sm:$0xff]  }
  0x51   :  { %942 = vmatpush1.bf16.msra.mxu1 %v2208_v39 }
  0x52   :  { %494 = vmatpush2.bf16.msra.mxu0 %v2185_v10  ;;  %943 = vmatprep.subr.bf16.mxu1 %v2213_v40  ;;  %v2256_v10 = vld [vmem:[#allocation2 + $0x290] ss:$8 sps:$4 sm:$0xff]  }
  0x53   :  { %495 = vmatprep.subr.bf16.mxu0 %v2187_v12  ;;  %v2264_v12 = vld [vmem:[#allocation2 + $0x284] ss:$8 sps:$4 sm:$0xff]  }
  0x55   :  { %944 = vmatpush1.bf16.msra.mxu1 %v2211_v41 }
  0x56   :  { %496 = vmatpush2.bf16.msra.mxu0 %v2191_v14  ;;  %945 = vmatprep.subr.bf16.mxu1 %v2216_v42  ;;  %v2262_v14 = vld [vmem:[#allocation2 + $0x280] ss:$8 sps:$4 sm:$0xff]  }
  0x57   :  { %497 = vmatprep.subr.bf16.mxu0 %v2193_v15  ;;  %v2267_v15 = vld [vmem:[#allocation2 + $0x204] ss:$8 sps:$4 sm:$0xff]  }
  0x59   :  { %946 = vmatpush1.bf16.msra.mxu1 %v2214_v43 }
  0x5a   :  { %498 = vmatpush2.bf16.msra.mxu0 %v2195_v22  ;;  %947 = vmatprep.subr.bf16.mxu1 %v2219_v44  ;;  %v2591_v22 = vsub.s32 1, %v2509_v18 }
  0x5b   :  { %986 = vmatprep.subr.bf16.mxu0 %v2222_v45 }
  0x5d   :  { %1915 = vmatmul.mubr.msk.bf16.vlgmr.msra.gmra.mxu0 %vm2565_vm7, %v1914_v25  ;;  %948 = vmatpush1.bf16.msra.mxu1 %v2217_v46  ;;  %v224_v25 = vrot.slane %v215_v24, %v2591_v22 }
  0x5e   :  { %509 = vmatprep.mubr.bf16.mxu0 %v165_v26  ;;  %987 = vmatpush1.bf16.msra.mxu0 %v2220_v47 }
  0x5f   :  { %949 = vmatprep.subr.bf16.mxu1 %v2225_v48  ;;  %988 = vmatprep.subr.bf16.mxu0 %v2228_v49 }
  0x61   :  { %950 = vmatpush2.bf16.msra.mxu1 %v2223_v50 }
  0x62   :  { %989 = vmatpush1.bf16.msra.mxu0 %v2226_v52  ;;  %951 = vmatprep.subr.bf16.mxu1 %v2231_v53 }
  0x63   :  { %990 = vmatprep.subr.bf16.mxu0 %v2234_v54 }
  0x65   :  { %1918 = vmatmul.mubr.msk.bf16.gmra.mxu0 %vm2577_vm10, %v1917_v31  ;;  %952 = vmatpush2.bf16.msra.mxu1 %v2229_v55 }
  0x66   :  { %1018 = vmatprep.mubr.bf16.mxu0 %v2472_v0  ;;  %991 = vmatpush1.bf16.msra.mxu0 %v2232_v56 }
  0x67   :  { %953 = vmatprep.subr.bf16.mxu1 %v2237_v57  ;;  %992 = vmatprep.subr.bf16.mxu0 %v2240_v58  ;;  %v2598_v57 = vsub.s32 0, %v2509_v18 }
  0x69   :  { %954 = vmatpush2.bf16.msra.mxu1 %v2235_v59 }
  0x6a   :  { %993 = vmatpush1.bf16.msra.mxu0 %v2238_v60  ;;  %955 = vmatprep.subr.bf16.mxu1 %v2243_v61  ;;  %v220_v60 = vrot.slane %v215_v24, %v2598_v57 }
  0x6b   :  { %994 = vmatprep.subr.bf16.mxu0 %v2246_v62 }
  0x6d   :  { %956 = vmatpush2.bf16.msra.mxu1 %v2241_v63 }
  0x6e   :  { %995 = vmatpush1.bf16.msra.mxu0 %v2244_v1  ;;  %957 = vmatprep.subr.bf16.mxu1 %v2249_v3 }
  0x6f   :  { %996 = vmatprep.subr.bf16.mxu0 %v2252_v4 }
  0x71   :  { %958 = vmatpush2.bf16.msra.mxu1 %v2247_v5 }
  0x72   :  { %997 = vmatpush1.bf16.msra.mxu0 %v2250_v6  ;;  %959 = vmatprep.subr.bf16.mxu1 %v2255_v7 }
  0x73   :  { %998 = vmatprep.subr.bf16.mxu0 %v2258_v8 }
  0x75   :  { %960 = vmatpush2.bf16.msra.mxu1 %v2253_v9 }
  0x76   :  { %999 = vmatpush1.bf16.msra.mxu0 %v2256_v10  ;;  %961 = vmatprep.subr.bf16.mxu1 %v2261_v11 }
  0x77   :  { %1000 = vmatprep.subr.bf16.mxu0 %v2264_v12 }
  0x79   :  { %962 = vmatpush2.bf16.msra.mxu1 %v2259_v13 }
  0x7a   :  { %1001 = vmatpush1.bf16.msra.mxu0 %v2262_v14  ;;  %963 = vmatprep.subr.bf16.mxu1 %v2267_v15 }
  0x7b   :  { %1399 = vmatprep.subr.bf16.mxu0 %v2270_v17 }
  0x7d   :  { %964 = vmatpush2.bf16.msra.mxu1 %v2265_v16 }
 0x100   :  { %v554_v19 = vpop.f32.mrf.mxu1 }
 0x102   :  { %v556_v21 = vpop.f32.mrf.mxu1 }
 0x104   :  { %v558_v23 = vpop.f32.mrf.mxu1 }
 0x106   :  { %v560_v27 = vpop.f32.mrf.mxu1 }
 0x108   :  { %v564_v32 = vpop.f32.mrf.mxu1 }
 0x10a   :  { %v566_v37 = vpop.f32.mrf.mxu1 }
 0x10c   :  { %v568_v43 = vpop.f32.mrf.mxu1 }
 0x10e   :  { %v570_v49 = vpop.f32.mrf.mxu1 }
 0x11d   :  { %v501_v26 = vpop.f32.mrf.mxu0 }
 0x11e   :  { %v502_v63 = vadd.f32 %v501_v26, %v220_v60 }
 0x11f   :  { %v503_v29 = vpop.f32.mrf.mxu0 }
 0x120   :  { %v504_v30 = vadd.f32 %v503_v29, %v224_v25  ;;  %v555_v4 = vadd.f32 %v554_v19, %v502_v63  ;;  %v2268_v29 = vld [vmem:[#allocation2 + $0x370] ss:$8 sps:$4 sm:$0xff]   ;;  %v2300_v63 = vld [vmem:[#allocation2 + $0x464] ss:$8 sps:$4 sm:$0xff]  }
 0x121   :  { %v505_v31 = vpop.f32.mrf.mxu0 }
 0x122   :  { %v557_v33 = vadd.f32 %v556_v21, %v504_v30  ;;  %v506_v1 = vadd.f32 %v505_v31, %v220_v60 }
 0x123   :  { %v507_v34 = vpop.f32.mrf.mxu0 }
 0x124   :  { %v1925_v35 = vmul.f32 -1.442695, %v557_v33  ;;  %v508_v36 = vadd.f32 %v507_v34, %v224_v25  ;;  %v559_v5 = vadd.f32 %v558_v23, %v506_v1  ;;  %v2295_v1 = vld [vmem:[#allocation2 + $0x3f0] ss:$8 sps:$4 sm:$0xff]  }
 0x125   :  { %v511_v38 = vpop.f32.mrf.mxu0 }
 0x126   :  { %2372 = vpow2.f32 %v1925_v35  ;;  %v561_v39 = vadd.f32 %v560_v27, %v508_v36  ;;  %v512_v6 = vadd.f32 %v511_v38, %v220_v60 }
 0x127   :  { %v513_v40 = vpop.f32.mrf.mxu0 }
 0x128   :  { %v1926_v41 = vmul.f32 -1.442695, %v561_v39  ;;  %v514_v42 = vadd.f32 %v513_v40, %v224_v25  ;;  %v565_v10 = vadd.f32 %v564_v32, %v512_v6  ;;  %v2301_v6 = vld [vmem:[#allocation2 + $0x3e0] ss:$8 sps:$4 sm:$0xff]  }
 0x129   :  { %v515_v44 = vpop.f32.mrf.mxu0 }
 0x12a   :  { %2374 = vpow2.f32 %v1926_v41  ;;  %v567_v45 = vadd.f32 %v566_v37, %v514_v42  ;;  %v516_v11 = vadd.f32 %v515_v44, %v220_v60  ;;  %v2273_v44 = vld [vmem:[#allocation2 + $0x364] ss:$8 sps:$4 sm:$0xff]   ;;  %v2289_v60 = vld [vmem:[#allocation2 + $0x300] ss:$8 sps:$4 sm:$0xff]  }
 0x12b   :  { %v517_v46 = vpop.f32.mrf.mxu0 }
 0x12c   :  { %v1927_v47 = vmul.f32 -1.442695, %v567_v45  ;;  %v518_v48 = vadd.f32 %v517_v46, %v224_v25  ;;  %v569_v16 = vadd.f32 %v568_v43, %v516_v11  ;;  %v2271_v45 = vld [vmem:[#allocation2 + $0x360] ss:$8 sps:$4 sm:$0xff]   ;;  %v2276_v46 = vld [vmem:[#allocation2 + $0x354] ss:$8 sps:$4 sm:$0xff]  }
 0x12d   :  { %v2310_v11 = vld [vmem:[#allocation2 + $0x440] ss:$8 sps:$4 sm:$0xff]  }
 0x12e   :  { %2376 = vpow2.f32 %v1927_v47  ;;  %v571_v50 = vadd.f32 %v570_v49, %v518_v48  ;;  %v2274_v47 = vld [vmem:[#allocation2 + $0x350] ss:$8 sps:$4 sm:$0xff]   ;;  %v2279_v48 = vld [vmem:[#allocation2 + $0x344] ss:$8 sps:$4 sm:$0xff]   ;;  %v2277_v49 = vld [vmem:[#allocation2 + $0x340] ss:$8 sps:$4 sm:$0xff]  }
 0x130   :  { %v1928_v52 = vmul.f32 -1.442695, %v571_v50  ;;  %v2282_v50 = vld [vmem:[#allocation2 + $0x334] ss:$8 sps:$4 sm:$0xff]  }
 0x132   :  { %2378 = vpow2.f32 %v1928_v52  ;;  %v2280_v52 = vld [vmem:[#allocation2 + $0x330] ss:$8 sps:$4 sm:$0xff]  }
 0x133   :  { %v2373_v53 = vpop.eup %2372 }
 0x134   :  { %v585_v54 = vadd.f32 1.0, %v2373_v53  ;;  %v2285_v53 = vld [vmem:[#allocation2 + $0x324] ss:$8 sps:$4 sm:$0xff]  }
 0x136   :  { %2380 = vrcp.f32 %v585_v54  ;;  %v2283_v54 = vld [vmem:[#allocation2 + $0x320] ss:$8 sps:$4 sm:$0xff]  }
 0x137   :  { %v2375_v55 = vpop.eup %2374 }
 0x138   :  { %v586_v56 = vadd.f32 1.0, %v2375_v55  ;;  %v2288_v55 = vld [vmem:[#allocation2 + $0x314] ss:$8 sps:$4 sm:$0xff]  }
 0x13a   :  { %2382 = vrcp.f32 %v586_v56  ;;  %v2286_v56 = vld [vmem:[#allocation2 + $0x310] ss:$8 sps:$4 sm:$0xff]  }
 0x13b   :  { %v2377_v58 = vpop.eup %2376 }
 0x13c   :  { %v587_v59 = vadd.f32 1.0, %v2377_v58  ;;  %v2291_v58 = vld [vmem:[#allocation2 + $0x304] ss:$8 sps:$4 sm:$0xff]  }
 0x13e   :  { %2384 = vrcp.f32 %v587_v59  ;;  %v2294_v59 = vld [vmem:[#allocation2 + $0x474] ss:$8 sps:$4 sm:$0xff]  }
 0x13f   :  { %v2379_v61 = vpop.eup %2378  ;;  %1452 = vmatprep.subr.bf16.mxu1 %v2294_v59 }
 0x140   :  { %v588_v62 = vadd.f32 1.0, %v2379_v61  ;;  %v2292_v61 = vld [vmem:[#allocation2 + $0x470] ss:$8 sps:$4 sm:$0xff]  }
 0x142   :  { %2386 = vrcp.f32 %v588_v62  ;;  %v2297_v62 = vld [vmem:[#allocation2 + $0x3f4] ss:$8 sps:$4 sm:$0xff]  }
 0x143   :  { %v2381_v3 = vpop.eup %2380 }
 0x144   :  { %v597_v8 = vmul.f32 %v2381_v3, %v555_v4  ;;  %v2298_v3 = vld [vmem:[#allocation2 + $0x460] ss:$8 sps:$4 sm:$0xff]   ;;  %v2303_v4 = vld [vmem:[#allocation2 + $0x3e4] ss:$8 sps:$4 sm:$0xff]  }
 0x146   :  { %v613_v17 = vrot.slane %v597_v8, 1  ;;  %v601_v30 = vrot.slane %v597_v8, 7 }
 0x147   :  { %v2383_v7 = vpop.eup %2382 }
 0x148   :  { %v598_v9 = vmul.f32 %v2383_v7, %v559_v5  ;;  %v2306_v5 = vld [vmem:[#allocation2 + $0x454] ss:$8 sps:$4 sm:$0xff]   ;;  %v2304_v7 = vld [vmem:[#allocation2 + $0x450] ss:$8 sps:$4 sm:$0xff]  }
 0x14a   :  { %v626_v12 = vpack.c.bf16 %v598_v9, %v597_v8  ;;  %v614_v15 = vrot.slane %v598_v9, 1  ;;  %v602_v26 = vrot.slane %v598_v9, 7  ;;  %v2309_v8 = vld [vmem:[#allocation2 + $0x3d4] ss:$8 sps:$4 sm:$0xff]   ;;  %v2312_v9 = vld [vmem:[#allocation2 + $0x444] ss:$8 sps:$4 sm:$0xff]  }
 0x14b   :  { %v2385_v13 = vpop.eup %2384 }
 0x14c   :  { %v599_v14 = vmul.f32 %v2385_v13, %v565_v10  ;;  %965 = vmatprep.mubr.bf16.mxu1 %v626_v12  ;;  %v619_v23 = vsel %vm152_vm1, %v613_v17, %v614_v15  ;;  %v607_v33 = vsel %vm139_vm8, %v601_v30, %v602_v26  ;;  %v2307_v10 = vld [vmem:[#allocation2 + $0x3d0] ss:$8 sps:$4 sm:$0xff]   ;;  %v2315_v12 = vld [vmem:[#allocation2 + $0x3c4] ss:$8 sps:$4 sm:$0xff]   ;;  %v2318_v13 = vld [vmem:[#allocation2 + $0x434] ss:$8 sps:$4 sm:$0xff]  }
 0x14e   :  { %v615_v21 = vrot.slane %v599_v14, 1  ;;  %v603_v39 = vrot.slane %v599_v14, 7 }
 0x14f   :  { %v2387_v24 = vpop.eup %2386 }
 0x150   :  { %v600_v25 = vmul.f32 %v2387_v24, %v569_v16  ;;  %v618_v19 = vsel %vm152_vm1, %v614_v15, %v615_v21  ;;  %v606_v42 = vsel %vm139_vm8, %v602_v26, %v603_v39  ;;  %v2316_v15 = vld [vmem:[#allocation2 + $0x430] ss:$8 sps:$4 sm:$0xff]   ;;  %v2321_v16 = vld [vmem:[#allocation2 + $0x3b4] ss:$8 sps:$4 sm:$0xff]   ;;  %v2322_v24 = vld [vmem:[#allocation2 + $0x420] ss:$8 sps:$4 sm:$0xff]  }
 0x151   :  { %v1985_v27 = vpack.c.bf16 %v618_v19, %v619_v23  ;;  %v2330_v26 = vld [vmem:[#allocation2 + $0x414] ss:$8 sps:$4 sm:$0xff]   ;;  %v2325_v19 = vld [vmem:[#allocation2 + $0x3a0] ss:$8 sps:$4 sm:$0xff]   ;;  %v2328_v23 = vld [vmem:[#allocation2 + $0x410] ss:$8 sps:$4 sm:$0xff]  }
 0x152   :  { %v604_v31 = vrot.slane %v600_v25, 7  ;;  %v616_v32 = vrot.slane %v600_v25, 1  ;;  %v629_v36 = vpack.c.bf16 %v600_v25, %v599_v14  ;;  %v2313_v14 = vld [vmem:[#allocation2 + $0x3c0] ss:$8 sps:$4 sm:$0xff]   ;;  %v2327_v25 = vld [vmem:[#allocation2 + $0x3a4] ss:$8 sps:$4 sm:$0xff]  }
 0x153   :  { %1986 = vmatmul.mubr.msk.bf16.vlgmr.msra.gmra.mxu0 %vm2535_vm3, %v1985_v27  ;;  %v2333_v27 = vld [vmem:[#allocation2 + $0x394] ss:$8 sps:$4 sm:$0xff]  }
 0x154   :  { %v608_v34 = vsel %vm139_vm8, %v604_v31, %v601_v30  ;;  %1028 = vmatprep.mubr.bf16.mxu0 %v2472_v0  ;;  %1400 = vmatpush1.bf16.msra.mxu0 %v2268_v29  ;;  %v617_v37 = vsel %vm152_vm1, %v615_v21, %v616_v32  ;;  %v620_v38 = vsel %vm152_vm1, %v616_v32, %v613_v17  ;;  %v2324_v17 = vld [vmem:[#allocation2 + $0x424] ss:$8 sps:$4 sm:$0xff]   ;;  %v2319_v21 = vld [vmem:[#allocation2 + $0x3b0] ss:$8 sps:$4 sm:$0xff]  }
 0x155   :  { %v1979_v35 = vpack.c.bf16 %v607_v33, %v608_v34  ;;  %v1988_v40 = vpack.c.bf16 %v620_v38, %v617_v37  ;;  %v605_v41 = vsel %vm139_vm8, %v603_v39, %v604_v31  ;;  %1401 = vmatprep.subr.bf16.mxu0 %v2273_v44  ;;  %v2336_v29 = vld [vmem:[#allocation2 + $0x404] ss:$8 sps:$4 sm:$0xff]   ;;  %v2331_v30 = vld [vmem:[#allocation2 + $0x390] ss:$8 sps:$4 sm:$0xff]   ;;  %v2334_v31 = vld [vmem:[#allocation2 + $0x400] ss:$8 sps:$4 sm:$0xff]  }
 0x156   :  { %v1982_v43 = vpack.c.bf16 %v605_v41, %v606_v42  ;;  %v2339_v32 = vld [vmem:[#allocation2 + $0x384] ss:$8 sps:$4 sm:$0xff]   ;;  %v2337_v33 = vld [vmem:[#allocation2 + $0x380] ss:$8 sps:$4 sm:$0xff]  }
 0x157   :  { %1980 = vmatmul.mubr.msk.bf16.vlgmr.msra.gmra.mxu1 %vm2565_vm7, %v1979_v35 }
 0x158   :  { %975 = vmatprep.mubr.bf16.mxu1 %v629_v36  ;;  %1402 = vmatpush1.bf16.msra.mxu0 %v2271_v45  ;;  %v1929_v36 = vld [vmem:[%s2681_s3 + $0x1] ss:$8 sm:$0x3] }
 0x159   :  { %1403 = vmatprep.subr.bf16.mxu0 %v2276_v46  ;;  %1453 = vmatpush1.bf16.msra.mxu1 %v2292_v61  ;;  %v690_v37 = vrot.slane %v1929_v36, %v2591_v22 }
 0x15a   :  { %1454 = vmatprep.subr.bf16.mxu1 %v2300_v63 }
 0x15b   :  { %1989 = vmatmul.mubr.msk.bf16.gmra.mxu0 %vm2547_vm5, %v1988_v40 }
 0x15c   :  { %1404 = vmatpush1.bf16.msra.mxu0 %v2274_v47 }
 0x15d   :  { %1405 = vmatprep.subr.bf16.mxu0 %v2279_v48  ;;  %1455 = vmatpush1.bf16.msra.mxu1 %v2298_v3 }
 0x15e   :  { %1456 = vmatprep.subr.bf16.mxu1 %v2306_v5 }
 0x15f   :  { %1983 = vmatmul.mubr.msk.bf16.gmra.mxu1 %vm2577_vm10, %v1982_v43 }
 0x160   :  { %1484 = vmatprep.mubr.bf16.mxu1 %v2472_v0  ;;  %1406 = vmatpush1.bf16.msra.mxu0 %v2277_v49 }
 0x161   :  { %1407 = vmatprep.subr.bf16.mxu0 %v2282_v50  ;;  %1457 = vmatpush1.bf16.msra.mxu1 %v2304_v7 }
 0x162   :  { %1458 = vmatprep.subr.bf16.mxu1 %v2312_v9 }
 0x164   :  { %1408 = vmatpush1.bf16.msra.mxu0 %v2280_v52 }
 0x165   :  { %1409 = vmatprep.subr.bf16.mxu0 %v2285_v53  ;;  %1459 = vmatpush1.bf16.msra.mxu1 %v2310_v11 }
 0x166   :  { %1460 = vmatprep.subr.bf16.mxu1 %v2318_v13 }
 0x168   :  { %1410 = vmatpush1.bf16.msra.mxu0 %v2283_v54 }
 0x169   :  { %1411 = vmatprep.subr.bf16.mxu0 %v2288_v55  ;;  %1461 = vmatpush1.bf16.msra.mxu1 %v2316_v15 }
 0x16a   :  { %1462 = vmatprep.subr.bf16.mxu1 %v2324_v17 }
 0x16c   :  { %1412 = vmatpush1.bf16.msra.mxu0 %v2286_v56 }
 0x16d   :  { %1413 = vmatprep.subr.bf16.mxu0 %v2291_v58  ;;  %1463 = vmatpush1.bf16.msra.mxu1 %v2322_v24 }
 0x16e   :  { %1464 = vmatprep.subr.bf16.mxu1 %v2330_v26 }
 0x170   :  { %1414 = vmatpush1.bf16.msra.mxu0 %v2289_v60 }
 0x171   :  { %1415 = vmatprep.subr.bf16.mxu0 %v2297_v62  ;;  %1465 = vmatpush1.bf16.msra.mxu1 %v2328_v23 }
 0x172   :  { %1466 = vmatprep.subr.bf16.mxu1 %v2336_v29 }
 0x174   :  { %1416 = vmatpush2.bf16.msra.mxu0 %v2295_v1 }
 0x175   :  { %1417 = vmatprep.subr.bf16.mxu0 %v2303_v4  ;;  %1467 = vmatpush1.bf16.msra.mxu1 %v2334_v31 }
 0x176   :  { %1668 = vmatprep.subr.bf16.mxu1 %v2342_v20 }
 0x178   :  { %1418 = vmatpush2.bf16.msra.mxu0 %v2301_v6 }
 0x179   :  { %1419 = vmatprep.subr.bf16.mxu0 %v2309_v8 }
 0x17c   :  { %1420 = vmatpush2.bf16.msra.mxu0 %v2307_v10  ;;  %v686_v10 = vrot.slane %v1929_v36, %v2598_v57 }
 0x17d   :  { %1421 = vmatprep.subr.bf16.mxu0 %v2315_v12 }
 0x180   :  { %1422 = vmatpush2.bf16.msra.mxu0 %v2313_v14 }
 0x181   :  { %1423 = vmatprep.subr.bf16.mxu0 %v2321_v16 }
 0x184   :  { %1424 = vmatpush2.bf16.msra.mxu0 %v2319_v21 }
 0x185   :  { %1425 = vmatprep.subr.bf16.mxu0 %v2327_v25 }
 0x188   :  { %1426 = vmatpush2.bf16.msra.mxu0 %v2325_v19 }
 0x189   :  { %1427 = vmatprep.subr.bf16.mxu0 %v2333_v27 }
 0x18c   :  { %1428 = vmatpush2.bf16.msra.mxu0 %v2331_v30 }
 0x18d   :  { %1429 = vmatprep.subr.bf16.mxu0 %v2339_v32 }
 0x190   :  { %1430 = vmatpush2.bf16.msra.mxu0 %v2337_v33 }
 0x213   :  { %v1020_v34 = vpop.f32.mrf.mxu0 }
 0x215   :  { %v1022_v35 = vpop.f32.mrf.mxu0 }
 0x217   :  { %v967_v38 = vpop.f32.mrf.mxu1  ;;  %v1024_v39 = vpop.f32.mrf.mxu0 }
 0x218   :  { %v968_v13 = vadd.f32 %v967_v38, %v686_v10 }
 0x219   :  { %v969_v40 = vpop.f32.mrf.mxu1  ;;  %v1026_v41 = vpop.f32.mrf.mxu0 }
 0x21a   :  { %v970_v42 = vadd.f32 %v969_v40, %v690_v37  ;;  %v1021_v16 = vadd.f32 %v1020_v34, %v968_v13 }
 0x21b   :  { %v971_v43 = vpop.f32.mrf.mxu1  ;;  %v1030_v44 = vpop.f32.mrf.mxu0 }
 0x21c   :  { %v1023_v45 = vadd.f32 %v1022_v35, %v970_v42  ;;  %v972_v14 = vadd.f32 %v971_v43, %v686_v10 }
 0x21d   :  { %v973_v46 = vpop.f32.mrf.mxu1  ;;  %v1032_v49 = vpop.f32.mrf.mxu0 }
 0x21e   :  { %v1990_v47 = vmul.f32 -1.442695, %v1023_v45  ;;  %v974_v48 = vadd.f32 %v973_v46, %v690_v37  ;;  %v1025_v17 = vadd.f32 %v1024_v39, %v972_v14 }
 0x21f   :  { %v977_v50 = vpop.f32.mrf.mxu1  ;;  %v1034_v56 = vpop.f32.mrf.mxu0 }
 0x220   :  { %2388 = vpow2.f32 %v1990_v47  ;;  %v1027_v52 = vadd.f32 %v1026_v41, %v974_v48  ;;  %v978_v21 = vadd.f32 %v977_v50, %v686_v10 }
 0x221   :  { %v979_v53 = vpop.f32.mrf.mxu1  ;;  %v1036_v63 = vpop.f32.mrf.mxu0 }
 0x222   :  { %v1991_v54 = vmul.f32 -1.442695, %v1027_v52  ;;  %v980_v55 = vadd.f32 %v979_v53, %v690_v37  ;;  %v1031_v19 = vadd.f32 %v1030_v44, %v978_v21 }
 0x223   :  { %v981_v58 = vpop.f32.mrf.mxu1 }
 0x224   :  { %2390 = vpow2.f32 %v1991_v54  ;;  %v1033_v59 = vadd.f32 %v1032_v49, %v980_v55  ;;  %v982_v23 = vadd.f32 %v981_v58, %v686_v10  ;;  %v2340_v55 = vld [vmem:[#allocation4 + $0xa8] ss:$12 sps:$4 sm:$0xff]   ;;  %v2343_v58 = vld [vmem:[#allocation4 + $0x90] ss:$12 sps:$4 sm:$0xff]  }
 0x225   :  { %v983_v60 = vpop.f32.mrf.mxu1 }
 0x226   :  { %v1992_v61 = vmul.f32 -1.442695, %v1033_v59  ;;  %v984_v62 = vadd.f32 %v983_v60, %v690_v37  ;;  %v1035_v32 = vadd.f32 %v1034_v56, %v982_v23  ;;  %v2345_v56 = vld [vmem:[#allocation4 + $0x94] ss:$12 sps:$4 sm:$0xff]   ;;  %v2348_v59 = vld [vmem:[#allocation4 + $0x7c] ss:$12 sps:$4 sm:$0xff]  }
 0x227   :  { %v2349_v60 = vld [vmem:[#allocation4 + $0x60] ss:$12 sps:$4 sm:$0xff]  }
 0x228   :  { %2392 = vpow2.f32 %v1992_v61  ;;  %v1037_v1 = vadd.f32 %v1036_v63, %v984_v62  ;;  %v2351_v61 = vld [vmem:[#allocation4 + $0x64] ss:$12 sps:$4 sm:$0xff]   ;;  %v2354_v62 = vld [vmem:[#allocation4 + $0x4c] ss:$12 sps:$4 sm:$0xff]  }
 0x229   :  { %v2355_v63 = vld [vmem:[#allocation4 + $0x30] ss:$12 sps:$4 sm:$0xff]  }
 0x22a   :  { %v1993_v3 = vmul.f32 -1.442695, %v1037_v1  ;;  %v2360_v1 = vld [vmem:[#allocation4 + $0x1c] ss:$12 sps:$4 sm:$0xff]  }
 0x22c   :  { %2394 = vpow2.f32 %v1993_v3  ;;  %v2358_v3 = vld [vmem:[#allocation4 + $0x18] ss:$12 sps:$4 sm:$0xff]  }
 0x22d   :  { %v2389_v4 = vpop.eup %2388 }
 0x22e   :  { %v1051_v5 = vadd.f32 1.0, %v2389_v4  ;;  %v2363_v4 = vld [vmem:[#allocation4 + $0x4] ss:$12 sps:$4 sm:$0xff]  }
 0x230   :  { %2396 = vrcp.f32 %v1051_v5  ;;  %v2361_v5 = vld [vmem:[#allocation4] ss:$12 sps:$4 sm:$0xff]  }
 0x231   :  { %v2391_v6 = vpop.eup %2390 }
 0x232   :  { %v1052_v7 = vadd.f32 1.0, %v2391_v6 }
 0x234   :  { %2398 = vrcp.f32 %v1052_v7 }
 0x235   :  { %v2393_v8 = vpop.eup %2392 }
 0x236   :  { %v1053_v9 = vadd.f32 1.0, %v2393_v8  ;;  %v1994_v8 = vld [vmem:[%s2681_s3 + $0x2] ss:$8 sm:$0x3] }
 0x238   :  { %2400 = vrcp.f32 %v1053_v9  ;;  %v1156_v9 = vrot.slane %v1994_v8, %v2591_v22 }
 0x239   :  { %v2395_v11 = vpop.eup %2394 }
 0x23a   :  { %v1054_v12 = vadd.f32 1.0, %v2395_v11 }
 0x23c   :  { %2402 = vrcp.f32 %v1054_v12 }
 0x23d   :  { %v2397_v15 = vpop.eup %2396 }
 0x23e   :  { %v1063_v25 = vmul.f32 %v2397_v15, %v1021_v16 }
 0x240   :  { %v1079_v33 = vrot.slane %v1063_v25, 1  ;;  %v1067_v41 = vrot.slane %v1063_v25, 7 }
 0x241   :  { %v2399_v24 = vpop.eup %2398 }
 0x242   :  { %v1064_v26 = vmul.f32 %v2399_v24, %v1025_v17 }
 0x244   :  { %v1092_v27 = vpack.c.bf16 %v1064_v26, %v1063_v25  ;;  %v1080_v31 = vrot.slane %v1064_v26, 1  ;;  %v1068_v38 = vrot.slane %v1064_v26, 7 }
 0x245   :  { %v2401_v29 = vpop.eup %2400 }
 0x246   :  { %v1065_v30 = vmul.f32 %v2401_v29, %v1031_v19  ;;  %1431 = vmatprep.mubr.bf16.mxu0 %v1092_v27  ;;  %v1085_v39 = vsel %vm152_vm1, %v1079_v33, %v1080_v31  ;;  %v1073_v44 = vsel %vm139_vm8, %v1067_v41, %v1068_v38 }
 0x248   :  { %v1081_v35 = vrot.slane %v1065_v30, 1  ;;  %v1069_v51 = vrot.slane %v1065_v30, 7 }
 0x249   :  { %v2403_v36 = vpop.eup %2402 }
 0x24a   :  { %v1066_v37 = vmul.f32 %v2403_v36, %v1035_v32  ;;  %v1084_v34 = vsel %vm152_vm1, %v1080_v31, %v1081_v35  ;;  %v1072_v53 = vsel %vm139_vm8, %v1068_v38, %v1069_v51 }
 0x24b   :  { %v2050_v40 = vpack.c.bf16 %v1084_v34, %v1085_v39 }
 0x24c   :  { %v1070_v42 = vrot.slane %v1066_v37, 7  ;;  %v1082_v43 = vrot.slane %v1066_v37, 1  ;;  %v1095_v47 = vpack.c.bf16 %v1066_v37, %v1065_v30 }
 0x24d   :  { %2051 = vmatmul.mubr.msk.bf16.vlgmr.msra.gmra.mxu1 %vm2535_vm3, %v2050_v40 }
 0x24e   :  { %v1074_v45 = vsel %vm139_vm8, %v1070_v42, %v1067_v41  ;;  %1494 = vmatprep.mubr.bf16.mxu1 %v2472_v0  ;;  %v1083_v48 = vsel %vm152_vm1, %v1081_v35, %v1082_v43  ;;  %v1086_v49 = vsel %vm152_vm1, %v1082_v43, %v1079_v33  ;;  %v1071_v52 = vsel %vm139_vm8, %v1069_v51, %v1070_v42 }
 0x24f   :  { %v2044_v46 = vpack.c.bf16 %v1073_v44, %v1074_v45  ;;  %v2053_v50 = vpack.c.bf16 %v1086_v49, %v1083_v48  ;;  %v2047_v54 = vpack.c.bf16 %v1071_v52, %v1072_v53  ;;  %1669 = vmatpush1.bf16.msra.mxu1 %v2340_v55 }
 0x250   :  { %1670 = vmatprep.subr.bf16.mxu1 %v2345_v56 }
 0x251   :  { %2045 = vmatmul.mubr.msk.bf16.vlgmr.msra.gmra.mxu0 %vm2565_vm7, %v2044_v46  ;;  %v1152_v46 = vrot.slane %v1994_v8, %v2598_v57 }
 0x252   :  { %1441 = vmatprep.mubr.bf16.mxu0 %v1095_v47 }
 0x253   :  { %1671 = vmatpush1.bf16.msra.mxu1 %v2343_v58 }
 0x254   :  { %1672 = vmatprep.subr.bf16.mxu1 %v2348_v59 }
 0x255   :  { %2054 = vmatmul.mubr.msk.bf16.gmra.mxu1 %vm2547_vm5, %v2053_v50 }
 0x256   :  { %1700 = vmatprep.mubr.bf16.mxu1 %v2472_v0  ;;  %v2352_v0 = vld [vmem:[#allocation4 + $0x48] ss:$12 sps:$4 sm:$0xff]  }
 0x257   :  { %1673 = vmatpush1.bf16.msra.mxu1 %v2346_v2 }
 0x258   :  { %1674 = vmatprep.subr.bf16.mxu1 %v2351_v61 }
 0x259   :  { %2048 = vmatmul.mubr.msk.bf16.gmra.mxu0 %vm2577_vm10, %v2047_v54 }
 0x25b   :  { %1675 = vmatpush1.bf16.msra.mxu1 %v2349_v60 }
 0x25c   :  { %1676 = vmatprep.subr.bf16.mxu1 %v2354_v62 }
 0x25f   :  { %1677 = vmatpush1.bf16.msra.mxu1 %v2352_v0 }
 0x260   :  { %1678 = vmatprep.subr.bf16.mxu1 %v2357_v28 }
 0x263   :  { %1679 = vmatpush1.bf16.msra.mxu1 %v2355_v63 }
 0x264   :  { %1680 = vmatprep.subr.bf16.mxu1 %v2360_v1 }
 0x267   :  { %1681 = vmatpush1.bf16.msra.mxu1 %v2358_v3 }
 0x268   :  { %1682 = vmatprep.subr.bf16.mxu1 %v2363_v4 }
 0x26b   :  { %1683 = vmatpush1.bf16.msra.mxu1 %v2361_v5 }
 0x30d   :  { %v1486_v6 = vpop.f32.mrf.mxu1 }
 0x30f   :  { %v1488_v7 = vpop.f32.mrf.mxu1 }
 0x311   :  { %v1433_v10 = vpop.f32.mrf.mxu0  ;;  %v1490_v11 = vpop.f32.mrf.mxu1 }
 0x312   :  { %v1434_v49 = vadd.f32 %v1433_v10, %v1152_v46 }
 0x313   :  { %v1435_v12 = vpop.f32.mrf.mxu0  ;;  %v1492_v13 = vpop.f32.mrf.mxu1 }
 0x314   :  { %v1436_v14 = vadd.f32 %v1435_v12, %v1156_v9  ;;  %v1487_v52 = vadd.f32 %v1486_v6, %v1434_v49 }
 0x315   :  { %v1437_v15 = vpop.f32.mrf.mxu0  ;;  %v1496_v16 = vpop.f32.mrf.mxu1 }
 0x316   :  { %v1489_v17 = vadd.f32 %v1488_v7, %v1436_v14  ;;  %v1438_v51 = vadd.f32 %v1437_v15, %v1152_v46 }
 0x317   :  { %v1439_v21 = vpop.f32.mrf.mxu0  ;;  %v1498_v26 = vpop.f32.mrf.mxu1 }
 0x318   :  { %v2055_v24 = vmul.f32 -1.442695, %v1489_v17  ;;  %v1440_v25 = vadd.f32 %v1439_v21, %v1156_v9  ;;  %v1491_v53 = vadd.f32 %v1490_v11, %v1438_v51  ;;  %v1711_v51 = vld [vmem:[%s2681_s3] sm:$0x60] }
 0x319   :  { %v1443_v19 = vpop.f32.mrf.mxu0  ;;  %v1500_v31 = vpop.f32.mrf.mxu1 }
 0x31a   :  { %2404 = vpow2.f32 %v2055_v24  ;;  %v1493_v23 = vadd.f32 %v1492_v13, %v1440_v25  ;;  %v1444_v58 = vadd.f32 %v1443_v19, %v1152_v46  ;;  %v2364_v19 = vld [vmem:[#allocation4 + $0xb0] ss:$12 sps:$4 sm:$0xff]  }
 0x31b   :  { %v1445_v27 = vpop.f32.mrf.mxu0  ;;  %v1502_v38 = vpop.f32.mrf.mxu1 }
 0x31c   :  { %v2056_v29 = vmul.f32 -1.442695, %v1493_v23  ;;  %v1446_v30 = vadd.f32 %v1445_v27, %v1156_v9  ;;  %v1497_v61 = vadd.f32 %v1496_v16, %v1444_v58  ;;  %v2474_v23 = vmov 0.0   ;;  %v2365_v27 = vld [vmem:[#allocation4 + $0x98] ss:$12 sps:$4 sm:$0xff]  }
 0x31d   :  { %v1447_v32 = vpop.f32.mrf.mxu0  ;;  %2093 = vmatprep.subr.bf16.mxu0 %v2474_v23  ;;  %2109 = vmatprep.mubr.msk.bf16.mxu0 %vm2475_vm12, %v2474_v23 }
 0x31e   :  { %2406 = vpow2.f32 %v2056_v29  ;;  %v1499_v33 = vadd.f32 %v1498_v26, %v1446_v30  ;;  %v1448_v59 = vadd.f32 %v1447_v32, %v1152_v46  ;;  %2094 = vmatpush3.bf16.msra.mxu0 %v2364_v19  ;;  %v2366_v29 = vld [vmem:[#allocation4 + $0x80] ss:$12 sps:$4 sm:$0xff]   ;;  %v2367_v30 = vld [vmem:[#allocation4 + $0x68] ss:$12 sps:$4 sm:$0xff]   ;;  %v2369_v32 = vld [vmem:[#allocation4 + $0x38] ss:$12 sps:$4 sm:$0xff]  }
 0x31f   :  { %v1449_v35 = vpop.f32.mrf.mxu0  ;;  %2095 = vmatprep.subr.bf16.mxu0 %v2474_v23 }
 0x320   :  { %v2057_v36 = vmul.f32 -1.442695, %v1499_v33  ;;  %v1450_v37 = vadd.f32 %v1449_v35, %v1156_v9  ;;  %v1501_v62 = vadd.f32 %v1500_v31, %v1448_v59  ;;  %v2368_v31 = vld [vmem:[#allocation4 + $0x50] ss:$12 sps:$4 sm:$0xff]   ;;  %v2370_v33 = vld [vmem:[#allocation4 + $0x20] ss:$12 sps:$4 sm:$0xff]  }
 0x321   :  { %v2371_v35 = vld [vmem:[#allocation4 + $0x8] ss:$12 sps:$4 sm:$0xff]   ;;  %v2476_v59 = vmov 1983009808  }
 0x322   :  { %2408 = vpow2.f32 %v2057_v36  ;;  %v1503_v34 = vadd.f32 %v1502_v38, %v1450_v37  ;;  %2096 = vmatpush3.bf16.msra.mxu0 %v2365_v27  ;;  %v2059_v36 = vld [vmem:[%s2681_s3 + $0x3] ss:$8 sm:$0x3] }
 0x323   :  { %2097 = vmatprep.subr.bf16.mxu0 %v2474_v23  ;;  %v1573_v37 = vrot.slane %v2059_v36, %v2598_v57  ;;  %v1577_v38 = vrot.slane %v2059_v36, %v2591_v22 }
 0x324   :  { %v2058_v39 = vmul.f32 -1.442695, %v1503_v34 }
 0x326   :  { %2410 = vpow2.f32 %v2058_v39  ;;  %2098 = vmatpush3.bf16.msra.mxu0 %v2366_v29 }
 0x327   :  { %v2405_v40 = vpop.eup %2404  ;;  %2099 = vmatprep.subr.bf16.mxu0 %v2474_v23 }
 0x328   :  { %v1517_v41 = vadd.f32 1.0, %v2405_v40 }
 0x32a   :  { %2412 = vrcp.f32 %v1517_v41  ;;  %2100 = vmatpush3.bf16.msra.mxu0 %v2367_v30 }
 0x32b   :  { %v2407_v42 = vpop.eup %2406  ;;  %2101 = vmatprep.subr.bf16.mxu0 %v2474_v23 }
 0x32c   :  { %v1518_v43 = vadd.f32 1.0, %v2407_v42 }
 0x32e   :  { %2414 = vrcp.f32 %v1518_v43  ;;  %2102 = vmatpush3.bf16.msra.mxu0 %v2368_v31 }
 0x32f   :  { %v2409_v44 = vpop.eup %2408  ;;  %2103 = vmatprep.subr.bf16.mxu0 %v2474_v23 }
 0x330   :  { %v1519_v45 = vadd.f32 1.0, %v2409_v44 }
 0x332   :  { %2416 = vrcp.f32 %v1519_v45  ;;  %2104 = vmatpush3.bf16.msra.mxu0 %v2369_v32 }
 0x333   :  { %v2411_v47 = vpop.eup %2410  ;;  %2105 = vmatprep.subr.bf16.mxu0 %v2474_v23 }
 0x334   :  { %v1520_v48 = vadd.f32 1.0, %v2411_v47 }
 0x336   :  { %2418 = vrcp.f32 %v1520_v48  ;;  %2106 = vmatpush3.bf16.msra.mxu0 %v2370_v33 }
 0x337   :  { %v2413_v50 = vpop.eup %2412  ;;  %2107 = vmatprep.subr.bf16.mxu0 %v2474_v23 }
 0x338   :  { %v1529_v20 = vmul.f32 %v2413_v50, %v1487_v52 }
 0x33a   :  { %2108 = vmatpush3.bf16.msra.mxu0 %v2371_v35 }
 0x33b   :  { %v2415_v54 = vpop.eup %2414 }
 0x33c   :  { %v1530_v55 = vmul.f32 %v2415_v54, %v1491_v53 }
 0x33e   :  { %v1533_v56 = vadd.f32 %v1530_v55, %v1529_v20 }
 0x33f   :  { %v2417_v60 = vpop.eup %2416 }
 0x340   :  { %v1534_v2 = vrot.slane %v1533_v56, 4  ;;  %v1531_v63 = vmul.f32 %v2417_v60, %v1497_v61  ;;  %v1740_v61 = vld [vmem:[%s2681_s3 + $0x4] ss:$0 sm:$0xff] }
 0x342   :  { %v1535_v0 = vadd.f32 %v1534_v2, %v1533_v56  ;;  %v1843_v2 = vunpack.c.l.s4 %v2476_v59 }
 0x343   :  { %v2419_v28 = vpop.eup %2418 }
 0x344   :  { %v1532_v1 = vmul.f32 %v2419_v28, %v1501_v62  ;;  %v1536_v3 = vrot.slane %v1535_v0, 2  ;;  %v1844_v60 = vunpack.c.0.s8 %v1843_v2 }
 0x346   :  { %v1540_v4 = vadd.f32 %v1532_v1, %v1531_v63  ;;  %v1537_v5 = vadd.f32 %v1536_v3, %v1535_v0  ;;  %v1847_v0 = vsub.s32 %v1844_v60, %v2509_v18 }
 0x348   :  { %v1538_v7 = vrot.slane %v1537_v5, 1  ;;  %v1541_v6 = vrot.slane %v1540_v4, 4 }
 0x34a   :  { %v1542_v8 = vadd.f32 %v1541_v6, %v1540_v4  ;;  %v1539_v9 = vadd.f32 %v1538_v7, %v1537_v5 }
 0x34c   :  { %v1543_v10 = vrot.slane %v1542_v8, 2  ;;  %v1547_v13 = vmul.f32 0.0625, %v1539_v9 }
 0x34e   :  { %v1544_v11 = vadd.f32 %v1543_v10, %v1542_v8  ;;  %v1549_v17 = vpack.c.bf16 %v1547_v13, %v1547_v13 }
 0x350   :  { %v1545_v12 = vrot.slane %v1544_v11, 1  ;;  %v1582_v21 = vunpack.c.l.b16 %v1549_v17 }
 0x352   :  { %v1546_v14 = vadd.f32 %v1545_v12, %v1544_v11 }
 0x354   :  { %v1548_v15 = vmul.f32 0.0625, %v1546_v14 }
 0x356   :  { %v1550_v16 = vpack.c.bf16 %v1548_v15, %v1548_v15 }
 0x358   :  { %v1583_v24 = vunpack.c.l.b16 %v1550_v16 }
 0x35a   :  { %v1585_v25 = vsel %vm1584_vm11, %v1583_v24, %v1582_v21 }
 0x35b   :  { %v1586_v26 = vpack.c.b16 %v1585_v25, %v1585_v25 }
 0x35d   :  { %1701 = vmatmul.mubr.bf16.vlgmr.msra.gmra.mxu1 %v1586_v26 }
 0x41d   :  { %v1702_v34 = vpop.f32.mrf.mxu1 }
 0x41e   :  { %v1703_v39 = vadd.f32 %v1702_v34, %v1573_v37 }
 0x41f   :  { %v1704_v40 = vpop.f32.mrf.mxu1 }
 0x420   :  { %v1705_v41 = vadd.f32 %v1704_v40, %v1577_v38  ;;  %v1709_v43 = vmax.f32 %v1703_v39, 0.0 }
 0x421   :  { %v1706_v42 = vpop.f32.mrf.mxu1 }
 0x422   :  { %v1710_v44 = vmax.f32 %v1705_v41, 0.0  ;;  %v1720_v50 = vrot.slane %v1709_v43, 3 }
 0x423   :  { %v1707_v45 = vpop.f32.mrf.mxu1 }
 0x424   :  { %v1712_v46 = vmul.f32 0.5, %v1710_v44  ;;  %v1841_v47 = vcombine.low %v1709_v43, %v1710_v44 }
 0x426   :  { %v1713_v48 = vmul.f32 1.442695, %v1712_v46  ;;  %v1848_v4 = vrot.slane %v1841_v47, %v1847_v0 }
 0x428   :  { %2420 = vpow2.f32 %v1713_v48 }
 0x435   :  { %v2421_v49 = vpop.eup %2420 }
 0x436   :  { %v1716_v57 = vrot.slane %v2421_v49, 3 }
 0x438   :  { %v1718_v22 = vmul.f32 %v1716_v57, %v1711_v51 }
 0x43a   :  { %v1722_v52 = vadd.f32 %v1720_v50, %v1718_v22 }
 0x43c   :  { %v1723_v53 = vpack.c.bf16 %v1722_v52, %v1722_v52 }
 0x43e   :  { %v1742_v54 = vshrl.u32 %v1723_v53, 16  ;;  %v1745_v20 = vshll.u32 %v1723_v53, 16 }
 0x440   :  { %v1744_v55 = vrot.slane %v1742_v54, 2  ;;  %v1747_v56 = vrot.slane %v1745_v20, 3 }
 0x442   :  { %v1748_v58 = vor.u32 %v1747_v56, %v1744_v55 }
 0x444   :  { %2110 = vmatmul.mubr.bf16.vlgmr.msra.gmra.mxu0 %v1748_v58 }
 0x504   :  { %v1832_v62 = vpop.f32.mrf.mxu0 }
 0x505   :  { %v1833_v28 = vadd.f32 %v1832_v62, %v1740_v61 }
 0x506   :  { %v2111_v63 = vpop.f32.mrf.mxu0 }
 0x507   :  { %v1838_v1 = vmax.f32 %v1833_v28, 0.0 }
 0x508   :  { %v1835_v3 = vpop.f32.mrf.mxu0 }
 0x509   :  { %v1855_v5 = vrot.slane %v1838_v1, %v1847_v0 }
 0x50a   :  { %v2112_v7 = vpop.f32.mrf.mxu0 }
 0x50b   :  { %v1856_v6 = vcombine.low %v1848_v4, %v1855_v5 }
 0x50d   :  { %1858 = vst [vmem:[%s2682_s4] sm:$0x3f] %v1856_v6 }
 0x50e   :  { %1863 = vsyncpa [#allocation3], 1 }
 0x50f   :  { %1864 = vsyncpa [#allocation5], 1 }

</bundles_post_ra>
